<compile_context>
chip_gen: v5e
topology: v5e:2x2
jax: 0.10.0
libtpu: 0.0.40
codegen_flags: <defaults>
</compile_context>

<pallas_src>
import math

import jax
import jax.numpy as jnp
from jax import lax
from jax.experimental import pallas as pl
from jax.experimental.pallas import tpu as pltpu

EPS_REG = 0.1       # SinkhornDistance.__init__ arg `eps` (regularization coeff)
MAX_ITER = 100      # SinkhornDistance.__init__ arg `max_iter`
REDUCTION = "none"  # default
THRESH = 0.1        # hard-coded in forward()

_NEG = -1e30        # finite "minus infinity" used to mask padded rows/cols


def _round_up(v, m):
    return (v + m - 1) // m * m


def _pick_check_interval(max_iter):
    """Largest k <= 8 dividing max_iter, so the loop never overruns max_iter."""
    for k in (8, 7, 6, 5, 4, 3, 2):
        if max_iter % k == 0:
            return k
    return 1


def _vmem_limit_bytes():
    """~75% of physical VMEM (≈48 MiB v7x, ≈96 MiB v5e/v6e); safe fallback."""
    try:
        cap = int(pltpu.get_tpu_info().vmem_capacity_bytes)
        return (cap * 3) // 4
    except Exception:
        return 48 * 1024 * 1024


def _pick_batch_block(n, p1p, p2p, dp, vmem_limit):
    """Samples per grid step, sized so buffers + loop-live tiles fit VMEM."""
    per_sample = 4 * (2 * p1p * dp          # x, double-buffered
                      + 2 * dp * p2p        # y^T, double-buffered
                      + 2 * p1p * p2p       # pi, C output buffers (single)
                      + 6 * p1p * p2p)      # m, exp temp, pi, C readback, slack
    budget = vmem_limit // 2                # headroom for compiler scratch
    b = max(1, budget // max(per_sample, 1))
    return int(min(b, n, 64))


def _make_sinkhorn_kernel(n, bb, p1, p2, p1p, p2p,
                          eps_reg, max_iter, thresh, check_every):
    log_mu = math.log(1.0 / p1 + 1e-8)   # log(mu + 1e-8), mu uniform over real rows
    log_nu = math.log(1.0 / p2 + 1e-8)
    neg_inv_eps = -1.0 / eps_reg

    def kernel(x_ref, yt_ref, cost_ref, pi_ref, c_ref):
        x = x_ref[...]          # (bb, p1p, dp)  f32
        yt = yt_ref[...]        # (bb, dp, p2p)  f32  (y transposed in the wrapper)

        # ---- cost matrix on the MXU ----
        xy = jnp.einsum("bid,bdj->bij", x, yt,
                        preferred_element_type=jnp.float32)            # (bb,p1p,p2p)
        x_sq = jnp.sum(x * x, axis=-1, keepdims=True)                   # (bb,p1p,1)
        y_sq = jnp.sum(yt * yt, axis=-2, keepdims=True)                 # (bb,1,p2p)
        C = x_sq + y_sq - 2.0 * xy                                      # (bb,p1p,p2p)

        # Write C out right away so neither C nor cn stays live across the loop.
        c_ref[...] = C

        # Validity masks for padded rows (sublanes) / padded columns (lanes).
        row_valid = lax.broadcasted_iota(jnp.int32, (1, p1p, 1), 1) < p1
        col_valid = lax.broadcasted_iota(jnp.int32, (1, 1, p2p), 2) < p2

        # Initial potentials pinned to -1e30 on padded rows/cols; the loop
        # carries m = -C/eps + f + g directly (f, g never materialized).
        f0 = jnp.where(row_valid, 0.0, _NEG).astype(jnp.float32)        # (1,p1p,1)
        g0 = jnp.where(col_valid, 0.0, _NEG).astype(jnp.float32)        # (1,1,p2p)
        m0 = C * neg_inv_eps + f0 + g0                                  # (bb,p1p,p2p)

        # Padded batch samples (from rounding N up to a multiple of bb) are
        # excluded from the stop criterion.
        first = pl.program_id(0) * bb
        bidx = lax.broadcasted_iota(jnp.int32, (bb, 1, 1), 0)
        bvalid = (first + bidx) < n
        valid_count = jnp.maximum(jnp.sum(bvalid.astype(jnp.float32)), 1.0)

        def sweep(_, carry):
            m, _ = carry
            # row (u) update — stable LSE over lanes
            rmax = jnp.max(m, axis=-1, keepdims=True)
            rlse = jnp.log(jnp.sum(jnp.exp(m - rmax), axis=-1, keepdims=True)) + rmax
            d_f = jnp.where(row_valid, log_mu - rlse, 0.0)
            m = m + d_f
            # column (v) update — stable LSE over sublanes (second exp kept on
            # purpose: reusing the row exp underflows for empty columns at
            # eps=0.1 and would produce -inf/NaN).
            cmax = jnp.max(m, axis=-2, keepdims=True)
            clse = jnp.log(jnp.sum(jnp.exp(m - cmax), axis=-2, keepdims=True)) + cmax
            d_g = jnp.where(col_valid, log_nu - clse, 0.0)
            m = m + d_g
            return m, d_f

        def outer_body(carry):
            it, m, _ = carry
            m, d_f = lax.fori_loop(
                0, check_every, sweep,
                (m, jnp.zeros((bb, p1p, 1), jnp.float32)), unroll=True)
            # err = mean over valid samples of eps * sum_i |u_new - u|
            per_sample = jnp.sum(jnp.abs(d_f), axis=-2, keepdims=True)  # (bb,1,1)
            err = eps_reg * jnp.sum(jnp.where(bvalid, per_sample, 0.0)) / valid_count
            return it + check_every, m, err

        def outer_cond(carry):
            it, _, err = carry
            return jnp.logical_and(it < max_iter, err >= thresh)

        # TODO(synk): PyTorch breaks on the full-batch-mean err every iteration
        # via err.item(); here the check is per batch-block and only every
        # `check_every` iterations, so a block may run a few extra (never fewer)
        # Sinkhorn sweeps than the reference before stopping.
        _, m, _ = lax.while_loop(
            outer_cond, outer_body,
            (jnp.asarray(0, jnp.int32), m0, jnp.asarray(1e30, jnp.float32)))

        pi = jnp.exp(m)              # padded rows/cols underflow to exactly 0
        pi_ref[...] = pi
        C_back = c_ref[...]          # re-read C instead of keeping it live
        cost = jnp.sum(jnp.sum(pi * C_back, axis=-1, keepdims=True),
                       axis=-2, keepdims=True)                          # (bb,1,1)
        cost_ref[...] = cost

    return kernel


def sinkhorn_distance(x, y, eps_reg=EPS_REG, max_iter=MAX_ITER,
                      reduction=REDUCTION, thresh=THRESH):
    """Returns (cost, pi, C) matching SinkhornDistance(eps, max_iter).forward."""
    x = jnp.asarray(x, jnp.float32)
    y = jnp.asarray(y, jnp.float32)
    n, p1, d = x.shape
    p2 = y.shape[1]

    # TPU-friendly padding: sublane dim -> multiple of 8, lane dims -> multiple of 128.
    # TODO(synk): for production shapes with P2 << 128, lane-packing several
    # samples per 128-lane tile would recover the wasted lane width.
    p1p = _round_up(p1, 8)
    p2p = _round_up(p2, 128)
    dp = _round_up(d, 128)

    vmem_limit = _vmem_limit_bytes()
    bb = _pick_batch_block(n, p1p, p2p, dp, vmem_limit)
    n_pad = _round_up(n, bb)

    xp = jnp.pad(x, ((0, n_pad - n), (0, p1p - p1), (0, dp - d)))       # (n_pad,p1p,dp)
    yp = jnp.pad(y, ((0, n_pad - n), (0, p2p - p2), (0, dp - d)))       # (n_pad,p2p,dp)
    ypt = jnp.swapaxes(yp, 1, 2)                                        # (n_pad,dp,p2p)

    check_every = _pick_check_interval(max_iter)
    kernel = _make_sinkhorn_kernel(n, bb, p1, p2, p1p, p2p,
                                   eps_reg, max_iter, thresh, check_every)

    # Single-buffer the two large outputs only when they are big enough to
    # matter (v7x 64 MiB/TC); per-step compute vastly exceeds the writeback DMA.
    # TODO(synk): when only `cost` is needed (mean/sum reduction), pi/C writeback
    # could be skipped entirely to halve HBM traffic on v5e.
    big_out = bb * p1p * p2p * 4 > (4 << 20)

    def _big_out_spec():
        if big_out:
            return pl.BlockSpec((bb, p1p, p2p), lambda b: (b, 0, 0),
                                pipeline_mode=pl.Buffered(1))
        return pl.BlockSpec((bb, p1p, p2p), lambda b: (b, 0, 0))

    cost3, pi_p, c_p = pl.pallas_call(
        kernel,
        out_shape=(
            jax.ShapeDtypeStruct((n_pad, 1, 1), jnp.float32),
            jax.ShapeDtypeStruct((n_pad, p1p, p2p), jnp.float32),
            jax.ShapeDtypeStruct((n_pad, p1p, p2p), jnp.float32),
        ),
        grid_spec=pltpu.PrefetchScalarGridSpec(
            num_scalar_prefetch=0,
            grid=(n_pad // bb,),
            in_specs=[
                pl.BlockSpec((bb, p1p, dp), lambda b: (b, 0, 0)),
                pl.BlockSpec((bb, dp, p2p), lambda b: (b, 0, 0)),
            ],
            out_specs=(
                pl.BlockSpec((bb, 1, 1), lambda b: (b, 0, 0)),
                _big_out_spec(),
                _big_out_spec(),
            ),
        ),
        compiler_params=pltpu.CompilerParams(
            # batch blocks are independent -> megacore split on v7x
            dimension_semantics=("parallel",),
            vmem_limit_bytes=vmem_limit,
        ),
    )(xp, ypt)

    cost = cost3[:n, 0, 0]
    pi = pi_p[:n, :p1, :p2]
    C = c_p[:n, :p1, :p2]
    if reduction == "mean":
        cost = jnp.mean(cost)
    elif reduction == "sum":
        cost = jnp.sum(cost)
    return cost, pi, C


if __name__ == "__main__":
    key = jax.random.PRNGKey(0)
    kx, ky = jax.random.split(key)
    N, P1, P2, D = 2, 8, 8, 32
    x = jax.random.normal(kx, (N, P1, D), dtype=jnp.float32)
    y = jax.random.normal(ky, (N, P2, D), dtype=jnp.float32)

    cost, pi, C = sinkhorn_distance(x, y)
    jax.block_until_ready((cost, pi, C))

    assert cost.shape == (N,)
    assert pi.shape == (N, P1, P2)
    assert C.shape == (N, P1, P2)
    assert bool(jnp.all(jnp.isfinite(cost)))
    assert bool(jnp.all(jnp.isfinite(pi)))
    assert bool(jnp.all(jnp.isfinite(C)))
    print("KERNEL_OK")
</pallas_src>

<mosaic_0001>
module attributes {stable_mosaic.version = 11 : i64} {
  func.func @kernel(%arg0: i32, %arg1: memref<2x8x128xf32, #tpu.memory_space<vmem>>, %arg2: memref<2x128x128xf32, #tpu.memory_space<vmem>>, %arg3: memref<2x1x1xf32, #tpu.memory_space<vmem>>, %arg4: memref<2x8x128xf32, #tpu.memory_space<vmem>>, %arg5: memref<2x8x128xf32, #tpu.memory_space<vmem>>) attributes {dimension_semantics = [#tpu.dimension_semantics<parallel>], iteration_bounds = array<i64: 1>, scalar_prefetch = 0 : i64, scratch_operands = 0 : i64, tpu.core_type = #tpu.core_type<tc>, window_params = [{transform_indices = @transform_0, window_bounds = array<i64: 2, 8, 128>}, {transform_indices = @transform_1, window_bounds = array<i64: 2, 128, 128>}, {transform_indices = @transform_2, window_bounds = array<i64: 2, 1, 1>}, {transform_indices = @transform_3, window_bounds = array<i64: 2, 8, 128>}, {transform_indices = @transform_4, window_bounds = array<i64: 2, 8, 128>}]} {
    %c0 = arith.constant 0 : index
    %c0_0 = arith.constant 0 : index
    %c0_1 = arith.constant 0 : index
    %0 = vector.load %arg1[%c0, %c0_0, %c0_1] : memref<2x8x128xf32, #tpu.memory_space<vmem>>, vector<2x8x128xf32>
    %c0_2 = arith.constant 0 : index
    %c0_3 = arith.constant 0 : index
    %c0_4 = arith.constant 0 : index
    %1 = vector.load %arg2[%c0_2, %c0_3, %c0_4] : memref<2x128x128xf32, #tpu.memory_space<vmem>>, vector<2x128x128xf32>
    "tpu.trace_start"() <{level = 10 : i32, message = "bid,bdj->bij"}> : () -> ()
    %cst = arith.constant dense<0.000000e+00> : vector<2x8x128xf32>
    %2 = tpu.matmul %0, %1, %cst {dimension_numbers = #tpu.dot_dimension_numbers<[2], [1], [1], [2], [0, 0, 0, 1, 1, 2], [0], [0]>} : vector<2x8x128xf32>, vector<2x128x128xf32>, vector<2x8x128xf32> -> vector<2x8x128xf32>
    "tpu.trace_stop"() : () -> ()
    %3 = arith.mulf %0, %0 : vector<2x8x128xf32>
    %cst_5 = arith.constant dense<0.000000e+00> : vector<2x8xf32>
    %4 = vector.multi_reduction <add>, %3, %cst_5 [2] : vector<2x8x128xf32> to vector<2x8xf32>
    %5 = vector.shape_cast %4 : vector<2x8xf32> to vector<2x8x1xf32>
    %6 = arith.mulf %1, %1 : vector<2x128x128xf32>
    %cst_6 = arith.constant dense<0.000000e+00> : vector<2x128xf32>
    %7 = vector.multi_reduction <add>, %6, %cst_6 [1] : vector<2x128x128xf32> to vector<2x128xf32>
    %8 = vector.shape_cast %7 : vector<2x128xf32> to vector<2x1x128xf32>
    %9 = vector.broadcast %5 : vector<2x8x1xf32> to vector<2x8x128xf32>
    %10 = vector.broadcast %8 : vector<2x1x128xf32> to vector<2x8x128xf32>
    %11 = arith.addf %9, %10 : vector<2x8x128xf32>
    %cst_7 = arith.constant 2.000000e+00 : f32
    %12 = vector.broadcast %cst_7 : f32 to vector<2x8x128xf32>
    %13 = arith.mulf %12, %2 : vector<2x8x128xf32>
    %14 = arith.subf %11, %13 : vector<2x8x128xf32>
    %c0_8 = arith.constant 0 : index
    %c0_9 = arith.constant 0 : index
    %c0_10 = arith.constant 0 : index
    %15 = vector.load %arg5[%c0_8, %c0_9, %c0_10] : memref<2x8x128xf32, #tpu.memory_space<vmem>>, vector<2x8x128xf32>
    tpu.vector_store %arg5[%c0_8, %c0_9, %c0_10], %14 {strides = array<i32>} : memref<2x8x128xf32, #tpu.memory_space<vmem>>, vector<2x8x128xf32>,
    %16 = tpu.iota {dimensions = array<i32: 1>} : vector<1x8x1xi32>
    %c8_i32 = arith.constant 8 : i32
    %17 = vector.broadcast %c8_i32 : i32 to vector<1x8x1xi32>
    %18 = arith.cmpi slt, %16, %17 : vector<1x8x1xi32>
    %19 = tpu.iota {dimensions = array<i32: 2>} : vector<1x1x128xi32>
    %c8_i32_11 = arith.constant 8 : i32
    %20 = vector.broadcast %c8_i32_11 : i32 to vector<1x1x128xi32>
    %21 = arith.cmpi slt, %19, %20 : vector<1x1x128xi32>
    %cst_12 = arith.constant 0.000000e+00 : f32
    %cst_13 = arith.constant -1.000000e+30 : f32
    %22 = vector.broadcast %cst_12 : f32 to vector<1x8x1xf32>
    %23 = vector.broadcast %cst_13 : f32 to vector<1x8x1xf32>
    %24 = arith.select %18, %22, %23 : vector<1x8x1xi1>, vector<1x8x1xf32>
    %cst_14 = arith.constant 0.000000e+00 : f32
    %cst_15 = arith.constant -1.000000e+30 : f32
    %25 = vector.broadcast %cst_14 : f32 to vector<1x1x128xf32>
    %26 = vector.broadcast %cst_15 : f32 to vector<1x1x128xf32>
    %27 = arith.select %21, %25, %26 : vector<1x1x128xi1>, vector<1x1x128xf32>
    %cst_16 = arith.constant -1.000000e+01 : f32
    %28 = vector.broadcast %cst_16 : f32 to vector<2x8x128xf32>
    %29 = arith.mulf %14, %28 : vector<2x8x128xf32>
    %30 = vector.broadcast %24 : vector<1x8x1xf32> to vector<2x8x128xf32>
    %31 = arith.addf %29, %30 : vector<2x8x128xf32>
    %32 = vector.broadcast %27 : vector<1x1x128xf32> to vector<2x8x128xf32>
    %33 = arith.addf %31, %32 : vector<2x8x128xf32>
    %c2_i32 = arith.constant 2 : i32
    %34 = arith.muli %arg0, %c2_i32 : i32
    %35 = tpu.iota {dimensions = array<i32: 0>} : vector<2x1x1xi32>
    %36 = vector.broadcast %34 : i32 to vector<2x1x1xi32>
    %37 = arith.addi %36, %35 : vector<2x1x1xi32>
    %c2_i32_17 = arith.constant 2 : i32
    %38 = vector.broadcast %c2_i32_17 : i32 to vector<2x1x1xi32>
    %39 = arith.cmpi slt, %37, %38 : vector<2x1x1xi32>
    %40 = arith.extui %39 : vector<2x1x1xi1> to vector<2x1x1xi32>
    %41 = arith.sitofp %40 : vector<2x1x1xi32> to vector<2x1x1xf32>
    %42 = vector.shape_cast %41 : vector<2x1x1xf32> to vector<1x2x1x1xf32>
    %cst_18 = arith.constant dense<0.000000e+00> : vector<1xf32>
    %43 = vector.multi_reduction <add>, %42, %cst_18 [1, 2, 3] : vector<1x2x1x1xf32> to vector<1xf32>
    %44 = vector.shape_cast %43 : vector<1xf32> to vector<1x1x1x1xf32>
    %45 = vector.extract %44[0, 0, 0, 0] : f32 from vector<1x1x1x1xf32>
    %cst_19 = arith.constant 1.000000e+00 : f32
    %46 = arith.maximumf %45, %cst_19 : f32
    %c0_i32 = arith.constant 0 : i32
    %cst_20 = arith.constant 1.000000e+30 : f32
    %47:3 = scf.while (%arg6 = %c0_i32, %arg7 = %33, %arg8 = %cst_20) : (i32, vector<2x8x128xf32>, f32) -> (i32, vector<2x8x128xf32>, f32) {
      %c100_i32 = arith.constant 100 : i32
      %57 = arith.cmpi slt, %arg6, %c100_i32 : i32
      %cst_32 = arith.constant 1.000000e-01 : f32
      %58 = arith.cmpf oge, %arg8, %cst_32 : f32
      %59 = arith.andi %57, %58 : i1
      scf.condition(%59) %arg6, %arg7, %arg8 : i32, vector<2x8x128xf32>, f32
    } do {
    ^bb0(%arg6: i32, %arg7: vector<2x8x128xf32>, %arg8: f32):
      %cst_32 = arith.constant 0.000000e+00 : f32
      %57 = vector.broadcast %cst_32 : f32 to vector<2x8x1xf32>
      %c0_i32_33 = arith.constant 0 : i32
      %cst_34 = arith.constant dense<0xFF800000> : vector<2x8xf32>
      %58 = vector.multi_reduction <maximumf>, %arg7, %cst_34 [2] : vector<2x8x128xf32> to vector<2x8xf32>
      %59 = vector.shape_cast %58 : vector<2x8xf32> to vector<2x8x1xf32>
      %60 = vector.broadcast %59 : vector<2x8x1xf32> to vector<2x8x128xf32>
      %61 = arith.subf %arg7, %60 : vector<2x8x128xf32>
      %62 = math.exp %61 : vector<2x8x128xf32>
      %cst_35 = arith.constant dense<0.000000e+00> : vector<2x8xf32>
      %63 = vector.multi_reduction <add>, %62, %cst_35 [2] : vector<2x8x128xf32> to vector<2x8xf32>
      %64 = vector.shape_cast %63 : vector<2x8xf32> to vector<2x8x1xf32>
      %65 = math.log %64 : vector<2x8x1xf32>
      %66 = arith.addf %65, %59 : vector<2x8x1xf32>
      %cst_36 = arith.constant -2.07944155 : f32
      %67 = vector.broadcast %cst_36 : f32 to vector<2x8x1xf32>
      %68 = arith.subf %67, %66 : vector<2x8x1xf32>
      %cst_37 = arith.constant 0.000000e+00 : f32
      %69 = vector.shape_cast %18 : vector<1x8x1xi1> to vector<1x8x1xi1>
      %70 = vector.broadcast %69 : vector<1x8x1xi1> to vector<2x8x1xi1>
      %71 = vector.broadcast %cst_37 : f32 to vector<2x8x1xf32>
      %72 = arith.select %70, %68, %71 : vector<2x8x1xi1>, vector<2x8x1xf32>
      %73 = vector.broadcast %72 : vector<2x8x1xf32> to vector<2x8x128xf32>
      %74 = arith.addf %arg7, %73 : vector<2x8x128xf32>
      %cst_38 = arith.constant dense<0xFF800000> : vector<2x128xf32>
      %75 = vector.multi_reduction <maximumf>, %74, %cst_38 [1] : vector<2x8x128xf32> to vector<2x128xf32>
      %76 = vector.shape_cast %75 : vector<2x128xf32> to vector<2x1x128xf32>
      %77 = vector.broadcast %76 : vector<2x1x128xf32> to vector<2x8x128xf32>
      %78 = arith.subf %74, %77 : vector<2x8x128xf32>
      %79 = math.exp %78 : vector<2x8x128xf32>
      %cst_39 = arith.constant dense<0.000000e+00> : vector<2x128xf32>
      %80 = vector.multi_reduction <add>, %79, %cst_39 [1] : vector<2x8x128xf32> to vector<2x128xf32>
      %81 = vector.shape_cast %80 : vector<2x128xf32> to vector<2x1x128xf32>
      %82 = math.log %81 : vector<2x1x128xf32>
      %83 = arith.addf %82, %76 : vector<2x1x128xf32>
      %cst_40 = arith.constant -2.07944155 : f32
      %84 = vector.broadcast %cst_40 : f32 to vector<2x1x128xf32>
      %85 = arith.subf %84, %83 : vector<2x1x128xf32>
      %cst_41 = arith.constant 0.000000e+00 : f32
      %86 = vector.shape_cast %21 : vector<1x1x128xi1> to vector<1x1x128xi1>
      %87 = vector.broadcast %86 : vector<1x1x128xi1> to vector<2x1x128xi1>
      %88 = vector.broadcast %cst_41 : f32 to vector<2x1x128xf32>
      %89 = arith.select %87, %85, %88 : vector<2x1x128xi1>, vector<2x1x128xf32>
      %90 = vector.broadcast %89 : vector<2x1x128xf32> to vector<2x8x128xf32>
      %91 = arith.addf %74, %90 : vector<2x8x128xf32>
      %c1_i32 = arith.constant 1 : i32
      %cst_42 = arith.constant dense<0xFF800000> : vector<2x8xf32>
      %92 = vector.multi_reduction <maximumf>, %91, %cst_42 [2] : vector<2x8x128xf32> to vector<2x8xf32>
      %93 = vector.shape_cast %92 : vector<2x8xf32> to vector<2x8x1xf32>
      %94 = vector.broadcast %93 : vector<2x8x1xf32> to vector<2x8x128xf32>
      %95 = arith.subf %91, %94 : vector<2x8x128xf32>
      %96 = math.exp %95 : vector<2x8x128xf32>
      %cst_43 = arith.constant dense<0.000000e+00> : vector<2x8xf32>
      %97 = vector.multi_reduction <add>, %96, %cst_43 [2] : vector<2x8x128xf32> to vector<2x8xf32>
      %98 = vector.shape_cast %97 : vector<2x8xf32> to vector<2x8x1xf32>
      %99 = math.log %98 : vector<2x8x1xf32>
      %100 = arith.addf %99, %93 : vector<2x8x1xf32>
      %cst_44 = arith.constant -2.07944155 : f32
      %101 = vector.broadcast %cst_44 : f32 to vector<2x8x1xf32>
      %102 = arith.subf %101, %100 : vector<2x8x1xf32>
      %cst_45 = arith.constant 0.000000e+00 : f32
      %103 = vector.shape_cast %18 : vector<1x8x1xi1> to vector<1x8x1xi1>
      %104 = vector.broadcast %103 : vector<1x8x1xi1> to vector<2x8x1xi1>
      %105 = vector.broadcast %cst_45 : f32 to vector<2x8x1xf32>
      %106 = arith.select %104, %102, %105 : vector<2x8x1xi1>, vector<2x8x1xf32>
      %107 = vector.broadcast %106 : vector<2x8x1xf32> to vector<2x8x128xf32>
      %108 = arith.addf %91, %107 : vector<2x8x128xf32>
      %cst_46 = arith.constant dense<0xFF800000> : vector<2x128xf32>
      %109 = vector.multi_reduction <maximumf>, %108, %cst_46 [1] : vector<2x8x128xf32> to vector<2x128xf32>
      %110 = vector.shape_cast %109 : vector<2x128xf32> to vector<2x1x128xf32>
      %111 = vector.broadcast %110 : vector<2x1x128xf32> to vector<2x8x128xf32>
      %112 = arith.subf %108, %111 : vector<2x8x128xf32>
      %113 = math.exp %112 : vector<2x8x128xf32>
      %cst_47 = arith.constant dense<0.000000e+00> : vector<2x128xf32>
      %114 = vector.multi_reduction <add>, %113, %cst_47 [1] : vector<2x8x128xf32> to vector<2x128xf32>
      %115 = vector.shape_cast %114 : vector<2x128xf32> to vector<2x1x128xf32>
      %116 = math.log %115 : vector<2x1x128xf32>
      %117 = arith.addf %116, %110 : vector<2x1x128xf32>
      %cst_48 = arith.constant -2.07944155 : f32
      %118 = vector.broadcast %cst_48 : f32 to vector<2x1x128xf32>
      %119 = arith.subf %118, %117 : vector<2x1x128xf32>
      %cst_49 = arith.constant 0.000000e+00 : f32
      %120 = vector.shape_cast %21 : vector<1x1x128xi1> to vector<1x1x128xi1>
      %121 = vector.broadcast %120 : vector<1x1x128xi1> to vector<2x1x128xi1>
      %122 = vector.broadcast %cst_49 : f32 to vector<2x1x128xf32>
      %123 = arith.select %121, %119, %122 : vector<2x1x128xi1>, vector<2x1x128xf32>
      %124 = vector.broadcast %123 : vector<2x1x128xf32> to vector<2x8x128xf32>
      %125 = arith.addf %108, %124 : vector<2x8x128xf32>
      %c2_i32_50 = arith.constant 2 : i32
      %cst_51 = arith.constant dense<0xFF800000> : vector<2x8xf32>
      %126 = vector.multi_reduction <maximumf>, %125, %cst_51 [2] : vector<2x8x128xf32> to vector<2x8xf32>
      %127 = vector.shape_cast %126 : vector<2x8xf32> to vector<2x8x1xf32>
      %128 = vector.broadcast %127 : vector<2x8x1xf32> to vector<2x8x128xf32>
      %129 = arith.subf %125, %128 : vector<2x8x128xf32>
      %130 = math.exp %129 : vector<2x8x128xf32>
      %cst_52 = arith.constant dense<0.000000e+00> : vector<2x8xf32>
      %131 = vector.multi_reduction <add>, %130, %cst_52 [2] : vector<2x8x128xf32> to vector<2x8xf32>
      %132 = vector.shape_cast %131 : vector<2x8xf32> to vector<2x8x1xf32>
      %133 = math.log %132 : vector<2x8x1xf32>
      %134 = arith.addf %133, %127 : vector<2x8x1xf32>
      %cst_53 = arith.constant -2.07944155 : f32
      %135 = vector.broadcast %cst_53 : f32 to vector<2x8x1xf32>
      %136 = arith.subf %135, %134 : vector<2x8x1xf32>
      %cst_54 = arith.constant 0.000000e+00 : f32
      %137 = vector.shape_cast %18 : vector<1x8x1xi1> to vector<1x8x1xi1>
      %138 = vector.broadcast %137 : vector<1x8x1xi1> to vector<2x8x1xi1>
      %139 = vector.broadcast %cst_54 : f32 to vector<2x8x1xf32>
      %140 = arith.select %138, %136, %139 : vector<2x8x1xi1>, vector<2x8x1xf32>
      %141 = vector.broadcast %140 : vector<2x8x1xf32> to vector<2x8x128xf32>
      %142 = arith.addf %125, %141 : vector<2x8x128xf32>
      %cst_55 = arith.constant dense<0xFF800000> : vector<2x128xf32>
      %143 = vector.multi_reduction <maximumf>, %142, %cst_55 [1] : vector<2x8x128xf32> to vector<2x128xf32>
      %144 = vector.shape_cast %143 : vector<2x128xf32> to vector<2x1x128xf32>
      %145 = vector.broadcast %144 : vector<2x1x128xf32> to vector<2x8x128xf32>
      %146 = arith.subf %142, %145 : vector<2x8x128xf32>
      %147 = math.exp %146 : vector<2x8x128xf32>
      %cst_56 = arith.constant dense<0.000000e+00> : vector<2x128xf32>
      %148 = vector.multi_reduction <add>, %147, %cst_56 [1] : vector<2x8x128xf32> to vector<2x128xf32>
      %149 = vector.shape_cast %148 : vector<2x128xf32> to vector<2x1x128xf32>
      %150 = math.log %149 : vector<2x1x128xf32>
      %151 = arith.addf %150, %144 : vector<2x1x128xf32>
      %cst_57 = arith.constant -2.07944155 : f32
      %152 = vector.broadcast %cst_57 : f32 to vector<2x1x128xf32>
      %153 = arith.subf %152, %151 : vector<2x1x128xf32>
      %cst_58 = arith.constant 0.000000e+00 : f32
      %154 = vector.shape_cast %21 : vector<1x1x128xi1> to vector<1x1x128xi1>
      %155 = vector.broadcast %154 : vector<1x1x128xi1> to vector<2x1x128xi1>
      %156 = vector.broadcast %cst_58 : f32 to vector<2x1x128xf32>
      %157 = arith.select %155, %153, %156 : vector<2x1x128xi1>, vector<2x1x128xf32>
      %158 = vector.broadcast %157 : vector<2x1x128xf32> to vector<2x8x128xf32>
      %159 = arith.addf %142, %158 : vector<2x8x128xf32>
      %c3_i32 = arith.constant 3 : i32
      %cst_59 = arith.constant dense<0xFF800000> : vector<2x8xf32>
      %160 = vector.multi_reduction <maximumf>, %159, %cst_59 [2] : vector<2x8x128xf32> to vector<2x8xf32>
      %161 = vector.shape_cast %160 : vector<2x8xf32> to vector<2x8x1xf32>
      %162 = vector.broadcast %161 : vector<2x8x1xf32> to vector<2x8x128xf32>
      %163 = arith.subf %159, %162 : vector<2x8x128xf32>
      %164 = math.exp %163 : vector<2x8x128xf32>
      %cst_60 = arith.constant dense<0.000000e+00> : vector<2x8xf32>
      %165 = vector.multi_reduction <add>, %164, %cst_60 [2] : vector<2x8x128xf32> to vector<2x8xf32>
      %166 = vector.shape_cast %165 : vector<2x8xf32> to vector<2x8x1xf32>
      %167 = math.log %166 : vector<2x8x1xf32>
      %168 = arith.addf %167, %161 : vector<2x8x1xf32>
      %cst_61 = arith.constant -2.07944155 : f32
      %169 = vector.broadcast %cst_61 : f32 to vector<2x8x1xf32>
      %170 = arith.subf %169, %168 : vector<2x8x1xf32>
      %cst_62 = arith.constant 0.000000e+00 : f32
      %171 = vector.shape_cast %18 : vector<1x8x1xi1> to vector<1x8x1xi1>
      %172 = vector.broadcast %171 : vector<1x8x1xi1> to vector<2x8x1xi1>
      %173 = vector.broadcast %cst_62 : f32 to vector<2x8x1xf32>
      %174 = arith.select %172, %170, %173 : vector<2x8x1xi1>, vector<2x8x1xf32>
      %175 = vector.broadcast %174 : vector<2x8x1xf32> to vector<2x8x128xf32>
      %176 = arith.addf %159, %175 : vector<2x8x128xf32>
      %cst_63 = arith.constant dense<0xFF800000> : vector<2x128xf32>
      %177 = vector.multi_reduction <maximumf>, %176, %cst_63 [1] : vector<2x8x128xf32> to vector<2x128xf32>
      %178 = vector.shape_cast %177 : vector<2x128xf32> to vector<2x1x128xf32>
      %179 = vector.broadcast %178 : vector<2x1x128xf32> to vector<2x8x128xf32>
      %180 = arith.subf %176, %179 : vector<2x8x128xf32>
      %181 = math.exp %180 : vector<2x8x128xf32>
      %cst_64 = arith.constant dense<0.000000e+00> : vector<2x128xf32>
      %182 = vector.multi_reduction <add>, %181, %cst_64 [1] : vector<2x8x128xf32> to vector<2x128xf32>
      %183 = vector.shape_cast %182 : vector<2x128xf32> to vector<2x1x128xf32>
      %184 = math.log %183 : vector<2x1x128xf32>
      %185 = arith.addf %184, %178 : vector<2x1x128xf32>
      %cst_65 = arith.constant -2.07944155 : f32
      %186 = vector.broadcast %cst_65 : f32 to vector<2x1x128xf32>
      %187 = arith.subf %186, %185 : vector<2x1x128xf32>
      %cst_66 = arith.constant 0.000000e+00 : f32
      %188 = vector.shape_cast %21 : vector<1x1x128xi1> to vector<1x1x128xi1>
      %189 = vector.broadcast %188 : vector<1x1x128xi1> to vector<2x1x128xi1>
      %190 = vector.broadcast %cst_66 : f32 to vector<2x1x128xf32>
      %191 = arith.select %189, %187, %190 : vector<2x1x128xi1>, vector<2x1x128xf32>
      %192 = vector.broadcast %191 : vector<2x1x128xf32> to vector<2x8x128xf32>
      %193 = arith.addf %176, %192 : vector<2x8x128xf32>
      %c4_i32 = arith.constant 4 : i32
      %cst_67 = arith.constant dense<0xFF800000> : vector<2x8xf32>
      %194 = vector.multi_reduction <maximumf>, %193, %cst_67 [2] : vector<2x8x128xf32> to vector<2x8xf32>
      %195 = vector.shape_cast %194 : vector<2x8xf32> to vector<2x8x1xf32>
      %196 = vector.broadcast %195 : vector<2x8x1xf32> to vector<2x8x128xf32>
      %197 = arith.subf %193, %196 : vector<2x8x128xf32>
      %198 = math.exp %197 : vector<2x8x128xf32>
      %cst_68 = arith.constant dense<0.000000e+00> : vector<2x8xf32>
      %199 = vector.multi_reduction <add>, %198, %cst_68 [2] : vector<2x8x128xf32> to vector<2x8xf32>
      %200 = vector.shape_cast %199 : vector<2x8xf32> to vector<2x8x1xf32>
      %201 = math.log %200 : vector<2x8x1xf32>
      %202 = arith.addf %201, %195 : vector<2x8x1xf32>
      %cst_69 = arith.constant -2.07944155 : f32
      %203 = vector.broadcast %cst_69 : f32 to vector<2x8x1xf32>
      %204 = arith.subf %203, %202 : vector<2x8x1xf32>
      %cst_70 = arith.constant 0.000000e+00 : f32
      %205 = vector.shape_cast %18 : vector<1x8x1xi1> to vector<1x8x1xi1>
      %206 = vector.broadcast %205 : vector<1x8x1xi1> to vector<2x8x1xi1>
      %207 = vector.broadcast %cst_70 : f32 to vector<2x8x1xf32>
      %208 = arith.select %206, %204, %207 : vector<2x8x1xi1>, vector<2x8x1xf32>
      %209 = vector.broadcast %208 : vector<2x8x1xf32> to vector<2x8x128xf32>
      %210 = arith.addf %193, %209 : vector<2x8x128xf32>
      %cst_71 = arith.constant dense<0xFF800000> : vector<2x128xf32>
      %211 = vector.multi_reduction <maximumf>, %210, %cst_71 [1] : vector<2x8x128xf32> to vector<2x128xf32>
      %212 = vector.shape_cast %211 : vector<2x128xf32> to vector<2x1x128xf32>
      %213 = vector.broadcast %212 : vector<2x1x128xf32> to vector<2x8x128xf32>
      %214 = arith.subf %210, %213 : vector<2x8x128xf32>
      %215 = math.exp %214 : vector<2x8x128xf32>
      %cst_72 = arith.constant dense<0.000000e+00> : vector<2x128xf32>
      %216 = vector.multi_reduction <add>, %215, %cst_72 [1] : vector<2x8x128xf32> to vector<2x128xf32>
      %217 = vector.shape_cast %216 : vector<2x128xf32> to vector<2x1x128xf32>
      %218 = math.log %217 : vector<2x1x128xf32>
      %219 = arith.addf %218, %212 : vector<2x1x128xf32>
      %cst_73 = arith.constant -2.07944155 : f32
      %220 = vector.broadcast %cst_73 : f32 to vector<2x1x128xf32>
      %221 = arith.subf %220, %219 : vector<2x1x128xf32>
      %cst_74 = arith.constant 0.000000e+00 : f32
      %222 = vector.shape_cast %21 : vector<1x1x128xi1> to vector<1x1x128xi1>
      %223 = vector.broadcast %222 : vector<1x1x128xi1> to vector<2x1x128xi1>
      %224 = vector.broadcast %cst_74 : f32 to vector<2x1x128xf32>
      %225 = arith.select %223, %221, %224 : vector<2x1x128xi1>, vector<2x1x128xf32>
      %226 = vector.broadcast %225 : vector<2x1x128xf32> to vector<2x8x128xf32>
      %227 = arith.addf %210, %226 : vector<2x8x128xf32>
      %c5_i32 = arith.constant 5 : i32
      %228 = math.absf %208 : vector<2x8x1xf32>
      %cst_75 = arith.constant dense<0.000000e+00> : vector<2x1xf32>
      %229 = vector.multi_reduction <add>, %228, %cst_75 [1] : vector<2x8x1xf32> to vector<2x1xf32>
      %230 = vector.shape_cast %229 : vector<2x1xf32> to vector<2x1x1xf32>
      %cst_76 = arith.constant 0.000000e+00 : f32
      %231 = vector.broadcast %cst_76 : f32 to vector<2x1x1xf32>
      %232 = arith.select %39, %230, %231 : vector<2x1x1xi1>, vector<2x1x1xf32>
      %233 = vector.shape_cast %232 : vector<2x1x1xf32> to vector<1x2x1x1xf32>
      %cst_77 = arith.constant dense<0.000000e+00> : vector<1xf32>
      %234 = vector.multi_reduction <add>, %233, %cst_77 [1, 2, 3] : vector<1x2x1x1xf32> to vector<1xf32>
      %235 = vector.shape_cast %234 : vector<1xf32> to vector<1x1x1x1xf32>
      %236 = vector.extract %235[0, 0, 0, 0] : f32 from vector<1x1x1x1xf32>
      %cst_78 = arith.constant 1.000000e-01 : f32
      %237 = arith.mulf %cst_78, %236 : f32
      %238 = arith.divf %237, %46 : f32
      %c5_i32_79 = arith.constant 5 : i32
      %239 = arith.addi %arg6, %c5_i32_79 : i32
      scf.yield %239, %227, %238 : i32, vector<2x8x128xf32>, f32
    }
    %48 = math.exp %47#1 : vector<2x8x128xf32>
    %c0_21 = arith.constant 0 : index
    %c0_22 = arith.constant 0 : index
    %c0_23 = arith.constant 0 : index
    %49 = vector.load %arg4[%c0_21, %c0_22, %c0_23] : memref<2x8x128xf32, #tpu.memory_space<vmem>>, vector<2x8x128xf32>
    tpu.vector_store %arg4[%c0_21, %c0_22, %c0_23], %48 {strides = array<i32>} : memref<2x8x128xf32, #tpu.memory_space<vmem>>, vector<2x8x128xf32>,
    %c0_24 = arith.constant 0 : index
    %c0_25 = arith.constant 0 : index
    %c0_26 = arith.constant 0 : index
    %50 = vector.load %arg5[%c0_24, %c0_25, %c0_26] : memref<2x8x128xf32, #tpu.memory_space<vmem>>, vector<2x8x128xf32>
    %51 = arith.mulf %48, %50 : vector<2x8x128xf32>
    %cst_27 = arith.constant dense<0.000000e+00> : vector<2x8xf32>
    %52 = vector.multi_reduction <add>, %51, %cst_27 [2] : vector<2x8x128xf32> to vector<2x8xf32>
    %53 = vector.shape_cast %52 : vector<2x8xf32> to vector<2x8x1xf32>
    %cst_28 = arith.constant dense<0.000000e+00> : vector<2x1xf32>
    %54 = vector.multi_reduction <add>, %53, %cst_28 [1] : vector<2x8x1xf32> to vector<2x1xf32>
    %55 = vector.shape_cast %54 : vector<2x1xf32> to vector<2x1x1xf32>
    %c0_29 = arith.constant 0 : index
    %c0_30 = arith.constant 0 : index
    %c0_31 = arith.constant 0 : index
    %56 = vector.load %arg3[%c0_29, %c0_30, %c0_31] : memref<2x1x1xf32, #tpu.memory_space<vmem>>, vector<2x1x1xf32>
    tpu.vector_store %arg3[%c0_29, %c0_30, %c0_31], %55 {strides = array<i32>} : memref<2x1x1xf32, #tpu.memory_space<vmem>>, vector<2x1x1xf32>,
    return
  }
  func.func @transform_0(%arg0: i32) -> (i32, i32, i32) {
    %c0_i32 = arith.constant 0 : i32
    %c0_i32_0 = arith.constant 0 : i32
    %c0_i32_1 = arith.constant 0 : i32
    return %arg0, %c0_i32, %c0_i32_0 : i32, i32, i32
  }
  func.func @transform_1(%arg0: i32) -> (i32, i32, i32) {
    %c0_i32 = arith.constant 0 : i32
    %c0_i32_0 = arith.constant 0 : i32
    %c0_i32_1 = arith.constant 0 : i32
    return %arg0, %c0_i32, %c0_i32_0 : i32, i32, i32
  }
  func.func @transform_2(%arg0: i32) -> (i32, i32, i32) {
    %c0_i32 = arith.constant 0 : i32
    %c0_i32_0 = arith.constant 0 : i32
    %c0_i32_1 = arith.constant 0 : i32
    return %arg0, %c0_i32, %c0_i32_0 : i32, i32, i32
  }
  func.func @transform_3(%arg0: i32) -> (i32, i32, i32) {
    %c0_i32 = arith.constant 0 : i32
    %c0_i32_0 = arith.constant 0 : i32
    %c0_i32_1 = arith.constant 0 : i32
    return %arg0, %c0_i32, %c0_i32_0 : i32, i32, i32
  }
  func.func @transform_4(%arg0: i32) -> (i32, i32, i32) {
    %c0_i32 = arith.constant 0 : i32
    %c0_i32_0 = arith.constant 0 : i32
    %c0_i32_1 = arith.constant 0 : i32
    return %arg0, %c0_i32, %c0_i32_0 : i32, i32, i32
  }
}

</mosaic_0001>

<bundles_post_ra>
// kernel: tpu_custom_call.1
= control target key start
LH: loop header
LB: loop body
LE: loop exit
PB: predicated region body
PF: predicated region fallthrough
CT: control target
= control target key end

     0   :  { %10 = vsyncpa [#allocation3], 0  ;;  %s1221_s0 = inlined_call_operand.hbm [shape: f32[2,8,128], index: 0, kind: input, shape index: {}]   ;;  %s1222_s1 = inlined_call_operand.hbm [shape: f32[2,128,128], index: 1, kind: input, shape index: {}]   ;;  %s1223_s2 = inlined_call_operand.vmem [shape: f32[2,1,1], index: 2, kind: output, shape index: {0}]   ;;  %s1224_s3 = inlined_call_operand.hbm [shape: f32[2,8,128], index: 3, kind: output, shape index: {1}]   ;;  %s1225_s4 = inlined_call_operand.hbm [shape: f32[2,8,128], index: 4, kind: output, shape index: {2}]  }
   0x1   :  { %11 = vsyncpa [#allocation6], 0 }
   0x2   :  { %12 = vsyncpa [#allocation4], 0 }
   0x3   :  { %13 = vsyncpa [#allocation9], 0  ;;  %s18_s17 = sshll.u32 %s1221_s0, 4  ;;  %s986_s18 = smov [#allocation2]   ;;  %s19_s17 = int_to_ptr.hbm [resolvable:$true] %s18_s17 }
   0x4   :  { %s20_s19 = sshll.u32 %s986_s18, 4  ;;  %s31_s22 = sshll.u32 %s1222_s1, 4  ;;  %s21_s19 = int_to_ptr.vmem [resolvable:$true] %s20_s19  ;;  %s32_s22 = int_to_ptr.hbm [resolvable:$true] %s31_s22 }
   0x5   :  { %s987_s23 = smov 128   ;;  %s988_s24 = smov 8  }
   0x6   :  { %26 = dma.hbm_to_vmem [thread:$0]  %s19_s17, 256, %s21_s19, [#allocation3], %s987_s23, %s987_s23, %s988_s24  }
   0x7   :  { %s989_s25 = smov [#allocation5]  }
   0x8   :  { %s33_s26 = sshll.u32 %s989_s25, 4  ;;  %s34_s26 = int_to_ptr.vmem [resolvable:$true] %s33_s26 }
   0x9   :  { %39 = dma.hbm_to_vmem [thread:$0]  %s32_s22, 4096, %s34_s26, [#allocation6], %s987_s23, %s987_s23, %s988_s24  }
   0xa   :  { %966 = dma.done.wait [#allocation3], 256  }
   0xb   :  { %967 = vsyncadd [#allocation3], 4294967040  ;;  %vm233_vm0 = vcmask 0  }
   0xc   :  { %968 = dma.done.wait [#allocation6], 4096  }
   0xd   :  { %969 = vsyncadd [#allocation6], 4294963200  ;;  %v990_v0 = vmov 0.0   ;;  %v1033_v3 = vld [vmem:[#allocation5 + $0x78] sm:$0xff]  ;;  %v1037_v5 = vld [vmem:[#allocation5 + $0x70] sm:$0xff]  ;;  %s992_s1 = smov 1.0  }
   0xe   :  { %v234_v1 = vsel %vm233_vm0, 1.0, %v990_v0  ;;  %v1035_v4 = vld [vmem:[#allocation5 + $0xf8] sm:$0xff]  ;;  %82 = vmatpush.msra.mxu0 %v1033_v3  ;;  %v1041_v6 = vld [vmem:[#allocation5 + $0xf0] sm:$0xff]  ;;  %v1043_v7 = vld [vmem:[#allocation5 + $0x68] sm:$0xff]  ;;  %s1154_s28 = smov 0  }
   0xf   :  { %v236_v2 = vadd.f32 %v234_v1, %v234_v1  ;;  %102 = vmatpush.msra.mxu1 %v1035_v4  ;;  %v1045_v8 = vld [vmem:[#allocation5 + $0xe8] sm:$0xff]  ;;  %v1049_v9 = vld [vmem:[#allocation5 + $0x60] sm:$0xff]  ;;  %v1055_v11 = vld [vmem:[#allocation5 + $0x58] sm:$0xff] }
  0x10   :  { %83 = vmatpush.msra.mxu0 %v1037_v5  ;;  %v1051_v10 = vld [vmem:[#allocation5 + $0xe0] sm:$0xff]  ;;  %v1057_v12 = vld [vmem:[#allocation5 + $0xd8] sm:$0xff]  ;;  %v1061_v13 = vld [vmem:[#allocation5 + $0x50] sm:$0xff] }
  0x11   :  { %237 = vadd.xlane.f32.xlu0 %v236_v2  ;;  %103 = vmatpush.msra.mxu1 %v1041_v6  ;;  %v1063_v14 = vld [vmem:[#allocation5 + $0xd0] sm:$0xff]  ;;  %v1065_v15 = vld [vmem:[#allocation5 + $0x48] sm:$0xff]  ;;  %v1087_v25 = vld [vmem:[#allocation5] sm:$0xff] }
  0x12   :  { %84 = vmatpush.msra.mxu0 %v1043_v7  ;;  %v1067_v16 = vld [vmem:[#allocation5 + $0xc8] sm:$0xff]  ;;  %v1069_v17 = vld [vmem:[#allocation5 + $0x10] sm:$0xff]  ;;  %v1089_v26 = vld [vmem:[#allocation5 + $0x80] sm:$0xff]  ;;  %v128_v29 = vmul.f32 %v1087_v25, %v1087_v25 }
  0x13   :  { %104 = vmatpush.msra.mxu1 %v1045_v8  ;;  %v1073_v18 = vld [vmem:[#allocation5 + $0x90] sm:$0xff]  ;;  %v1075_v19 = vld [vmem:[#allocation5 + $0x8] sm:$0xff]  ;;  %v130_v21 = vmul.f32 %v1069_v17, %v1069_v17  ;;  %v53_v28 = vld [vmem:[#allocation5 + $0x18] sm:$0xff]  ;;  %v144_v30 = vmul.f32 %v1089_v26, %v1089_v26 }
  0x14   :  { %85 = vmatpush.msra.mxu0 %v1049_v9  ;;  %v1077_v20 = vld [vmem:[#allocation5 + $0x88] sm:$0xff]  ;;  %v146_v22 = vmul.f32 %v1073_v18, %v1073_v18  ;;  %v129_v23 = vmul.f32 %v1075_v19, %v1075_v19  ;;  %v1091_v27 = vld [vmem:[#allocation2] sm:$0xff]  ;;  %v1099_v31 = vld [vmem:[#allocation2 + $0x8] sm:$0xff]  ;;  %v131_v35 = vmul.f32 %v53_v28, %v53_v28 }
  0x15   :  { %105 = vmatpush.msra.mxu1 %v1051_v10  ;;  %v145_v24 = vmul.f32 %v1077_v20, %v1077_v20  ;;  %v122_v32 = vmul.f32 %v1091_v27, %v1091_v27  ;;  %v58_v33 = vld [vmem:[#allocation5 + $0x40] sm:$0xff]  ;;  %v69_v36 = vld [vmem:[#allocation5 + $0x98] sm:$0xff]  ;;  %v123_v37 = vmul.f32 %v1099_v31, %v1099_v31  ;;  %v55_v46 = vld [vmem:[#allocation5 + $0x28] sm:$0xff] }
  0x16   :  { %86 = vmatpush.msra.mxu0 %v1055_v11  ;;  %v74_v34 = vld [vmem:[#allocation5 + $0xc0] sm:$0xff]  ;;  %v147_v39 = vmul.f32 %v69_v36, %v69_v36  ;;  %v160_v40 = vadd.f32 %v129_v23, %v128_v29  ;;  %v57_v42 = vld [vmem:[#allocation5 + $0x38] sm:$0xff]  ;;  %v56_v50 = vld [vmem:[#allocation5 + $0x30] sm:$0xff]  ;;  %v133_v52 = vmul.f32 %v55_v46, %v55_v46  ;;  %v136_v1 = vmul.f32 %v58_v33, %v58_v33 }
  0x17   :  { %106 = vmatpush.msra.mxu1 %v1057_v12  ;;  %v54_v38 = vld [vmem:[#allocation5 + $0x20] sm:$0xff]  ;;  %v181_v41 = vadd.f32 %v145_v24, %v144_v30  ;;  %v73_v43 = vld [vmem:[#allocation5 + $0xb8] sm:$0xff]  ;;  %126 = vadd.xlane.f32.xlu1 %v123_v37  ;;  %v72_v51 = vld [vmem:[#allocation5 + $0xb0] sm:$0xff]  ;;  %v134_v57 = vmul.f32 %v56_v50, %v56_v50  ;;  %v135_v61 = vmul.f32 %v57_v42, %v57_v42 }
  0x18   :  { %87 = vmatpush.msra.mxu0 %v1061_v13  ;;  %v132_v44 = vmul.f32 %v54_v38, %v54_v38  ;;  %v70_v45 = vld [vmem:[#allocation5 + $0xa0] sm:$0xff]  ;;  %v161_v48 = vadd.f32 %v160_v40, %v130_v21  ;;  %v71_v53 = vld [vmem:[#allocation5 + $0xa8] sm:$0xff]  ;;  %v150_v58 = vmul.f32 %v72_v51, %v72_v51  ;;  %v151_v62 = vmul.f32 %v73_v43, %v73_v43 }
  0x19   :  { %107 = vmatpush.msra.mxu1 %v1063_v14  ;;  %124 = vadd.xlane.f32.xlu0 %v122_v32  ;;  %v148_v47 = vmul.f32 %v70_v45, %v70_v45  ;;  %v182_v49 = vadd.f32 %v181_v41, %v146_v22  ;;  %v149_v54 = vmul.f32 %v71_v53, %v71_v53 }
  0x1a   :  { %88 = vmatpush.msra.mxu0 %v1065_v15  ;;  %v162_v55 = vadd.f32 %v161_v48, %v131_v35  ;;  %v152_v2 = vmul.f32 %v74_v34, %v74_v34  ;;  %v137_v23 = vmul.f32 %v1065_v15, %v1065_v15  ;;  %v153_v24 = vmul.f32 %v1067_v16, %v1067_v16 }
  0x1b   :  { %108 = vmatpush.msra.mxu1 %v1067_v16  ;;  %v183_v56 = vadd.f32 %v182_v49, %v147_v39  ;;  %v154_v15 = vmul.f32 %v1063_v14, %v1063_v14  ;;  %v155_v16 = vmul.f32 %v1057_v12, %v1057_v12  ;;  %v138_v12 = vmul.f32 %v1061_v13, %v1061_v13 }
  0x1c   :  { %89 = vmatpush.msra.mxu0 %v58_v33  ;;  %v163_v59 = vadd.f32 %v162_v55, %v132_v44  ;;  %v142_v40 = vmul.f32 %v1037_v5, %v1037_v5  ;;  %v143_v13 = vmul.f32 %v1033_v3, %v1033_v3  ;;  %v213_v55 = vlaneseq }
  0x1d   :  { %109 = vmatpush.msra.mxu1 %v74_v34  ;;  %v184_v60 = vadd.f32 %v183_v56, %v148_v47 }
  0x1e   :  { %90 = vmatpush.msra.mxu0 %v57_v42  ;;  %v164_v63 = vadd.f32 %v163_v59, %v133_v52  ;;  %v1143_v59 = vand.u32 127, %v213_v55 }
  0x1f   :  { %110 = vmatpush.msra.mxu1 %v73_v43  ;;  %v185_v0 = vadd.f32 %v184_v60, %v149_v54 }
  0x20   :  { %91 = vmatpush.msra.mxu0 %v56_v50  ;;  %v165_v21 = vadd.f32 %v164_v63, %v134_v57  ;;  %vm215_vm1 = vcmp.lt.s32.totalorder %v1143_v59, 8 }
  0x21   :  { %111 = vmatpush.msra.mxu1 %v72_v51  ;;  %v186_v22 = vadd.f32 %v185_v0, %v150_v58 }
  0x22   :  { %92 = vmatpush.msra.mxu0 %v55_v46  ;;  %v166_v29 = vadd.f32 %v165_v21, %v135_v61 }
  0x23   :  { %112 = vmatpush.msra.mxu1 %v71_v53  ;;  %v187_v30 = vadd.f32 %v186_v22, %v151_v62  ;;  %v991_v22 = vmov -1e+30  }
  0x24   :  { %93 = vmatpush.msra.mxu0 %v54_v38  ;;  %v167_v32 = vadd.f32 %v166_v29, %v136_v1 }
  0x25   :  { %113 = vmatpush.msra.mxu1 %v70_v45  ;;  %v188_v33 = vadd.f32 %v187_v30, %v152_v2 }
  0x26   :  { %94 = vmatpush.msra.mxu0 %v53_v28  ;;  %v168_v34 = vadd.f32 %v167_v32, %v137_v23  ;;  %v217_v23 = vsel %vm215_vm1, 0.0, %v991_v22 }
  0x27   :  { %114 = vmatpush.msra.mxu1 %v69_v36  ;;  %v189_v35 = vadd.f32 %v188_v33, %v153_v24 }
  0x28   :  { %95 = vmatpush.msra.mxu0 %v1069_v17  ;;  %v156_v17 = vmul.f32 %v1051_v10, %v1051_v10  ;;  %v139_v10 = vmul.f32 %v1055_v11, %v1055_v11  ;;  %v169_v38 = vadd.f32 %v168_v34, %v138_v12 }
  0x29   :  { %115 = vmatpush.msra.mxu1 %v1073_v18  ;;  %v190_v18 = vadd.f32 %v189_v35, %v154_v15 }
  0x2a   :  { %96 = vmatpush.msra.mxu0 %v1075_v19  ;;  %v157_v19 = vmul.f32 %v1045_v8, %v1045_v8  ;;  %v140_v8 = vmul.f32 %v1049_v9, %v1049_v9 }
  0x2b   :  { %116 = vmatpush.msra.mxu1 %v1077_v20  ;;  %v191_v20 = vadd.f32 %v190_v18, %v155_v16 }
  0x2c   :  { %97 = vmatpush.msra.mxu0 %v1087_v25  ;;  %v158_v25 = vmul.f32 %v1041_v6, %v1041_v6  ;;  %v141_v6 = vmul.f32 %v1043_v7, %v1043_v7 }
  0x2d   :  { %117 = vmatpush.msra.mxu1 %v1089_v26  ;;  %98 = vmatmul.f32.vlgmr.msra.gmra.mxu0 %v1091_v27  ;;  %v192_v26 = vadd.f32 %v191_v20, %v156_v17  ;;  %v159_v27 = vmul.f32 %v1035_v4, %v1035_v4  ;;  %v170_v4 = vadd.f32 %v169_v38, %v139_v10 }
  0x2e   :  { %118 = vmatmul.f32.vlgmr.msra.gmra.mxu1 %v1099_v31 }
  0x2f   :  { %v193_v28 = vadd.f32 %v192_v26, %v157_v19  ;;  %v171_v42 = vadd.f32 %v170_v4, %v140_v8 }
  0x31   :  { %v194_v14 = vadd.f32 %v193_v28, %v158_v25  ;;  %v172_v43 = vadd.f32 %v171_v42, %v141_v6 }
  0x33   :  { %v195_v31 = vadd.f32 %v194_v14, %v159_v27  ;;  %v173_v45 = vadd.f32 %v172_v43, %v142_v40 }
  0x35   :  { %v174_v46 = vadd.f32 %v173_v45, %v143_v13  ;;  %v196_v47 = vrot.slane %v195_v31, 4 }
  0x37   :  { %v175_v48 = vrot.slane %v174_v46, 4  ;;  %v197_v7 = vadd.f32 %v196_v47, %v195_v31 }
  0x39   :  { %v176_v49 = vadd.f32 %v175_v48, %v174_v46  ;;  %v198_v50 = vrot.slane %v197_v7, 2 }
  0x3b   :  { %v177_v51 = vrot.slane %v176_v49, 2  ;;  %v199_v52 = vadd.f32 %v198_v50, %v197_v7 }
  0x3d   :  { %v178_v5 = vadd.f32 %v177_v51, %v176_v49  ;;  %v200_v53 = vrot.slane %v199_v52, 1 }
  0x3f   :  { %v179_v54 = vrot.slane %v178_v5, 1  ;;  %v201_v56 = vadd.f32 %v200_v53, %v199_v52 }
  0x41   :  { %v180_v3 = vadd.f32 %v179_v54, %v178_v5 }
  0x84   :  { %v238_v36 = vpop.xlane.xlu0 %237 }
  0x85   :  { %v239_v37 = vrot.slane %v238_v36, 4 }
  0x87   :  { %v240_v39 = vadd.f32 %v239_v37, %v238_v36 }
  0x89   :  { %v241_v41 = vrot.slane %v240_v39, 2 }
  0x8a   :  { %v127_v57 = vpop.xlane.xlu1 %126 }
  0x8b   :  { %v242_v11 = vadd.f32 %v241_v41, %v240_v39  ;;  %v203_v60 = vadd.f32 %v201_v56, %v127_v57 }
  0x8c   :  { %v125_v58 = vpop.xlane.xlu0 %124 }
  0x8d   :  { %v243_v44 = vrot.slane %v242_v11, 1  ;;  %v202_v61 = vadd.f32 %v180_v3, %v125_v58 }
  0x8f   :  { %v244_v9 = vadd.f32 %v243_v44, %v242_v11 }
  0x91   :  { %733 = vpush %v244_v9 }
  0xaa   :  { %v99_v63 = vpop.f32.mrf.mxu0 }
  0xab   :  { %v119_v62 = vpop.f32.mrf.mxu1  ;;  %v204_v1 = vmul.f32 2.0, %v99_v63 }
  0xac   :  { %v205_v0 = vmul.f32 2.0, %v119_v62 }
  0xad   :  { %v206_v21 = vsub.f32 %v202_v61, %v204_v1 }
  0xae   :  { %v207_v2 = vsub.f32 %v203_v60, %v205_v0 }
  0xaf   :  { %v218_v29 = vmul.f32 -10.0, %v206_v21  ;;  %208 = vst [vmem:[#allocation8] sm:$0xff] %v206_v21 }
  0xb0   :  { %209 = vst [vmem:[#allocation8 + $0x8] sm:$0xff] %v207_v2  ;;  %v219_v24 = vmul.f32 -10.0, %v207_v2 }
  0xb1   :  { %v222_v32 = vadd.f32 %v218_v29, %v217_v23  }
  0xb2   :  { %v223_v30 = vadd.f32 %v219_v24, %v217_v23  }
  0xc2   :  { %s734_s0 = spop %733 }
  0xc3   :  { %s1148_s27 = smax.f32 %s992_s1, %s734_s0 }
  0xc4 LB: > { %258 = vmax.xlane.f32.xlu0 %v980_v32  ;;  %s648_s29 = sadd.s32 5, %s984_s28   ;;  %s984_s28 = sphi %s1154_s28, %s1228_s28   ;;  %v980_v32 = vphi %v222_v32, %v1227_v32   ;;  %v976_v30 = vphi %v223_v30, %v1226_v30  }
  0xc5   : > { %p252_p0 = scmp.lt.s32.totalorder %s648_s29, 100  ;;  %s1228_s28 = smov %s648_s29 }
  0xcc   : > { %260 = vmax.xlane.f32.xlu0 %v976_v30 }
 0x137   : > { %v259_v33 = vpop.xlane.xlu0 %258 }
 0x138   : > { %v262_v34 = vsub.f32 %v980_v32, %v259_v33 }
 0x13a   : > { %v264_v35 = vmul.f32 1.442695, %v262_v34 }
 0x13c   : > { %772 = vpow2.f32 %v264_v35 }
 0x13f   : > { %v261_v15 = vpop.xlane.xlu0 %260 }
 0x140   : > { %v263_v16 = vsub.f32 %v976_v30, %v261_v15 }
 0x142   : > { %v773_v17 = vpop.eup %772  ;;  %v266_v18 = vmul.f32 1.442695, %v263_v16 }
 0x143   : > { %268 = vadd.xlane.f32.xlu1 %v773_v17 }
 0x144   : > { %774 = vpow2.f32 %v266_v18 }
 0x14a   : > { %v775_v19 = vpop.eup %774 }
 0x14b   : > { %270 = vadd.xlane.f32.xlu1 %v775_v19 }
 0x1b6   : > { %v269_v20 = vpop.xlane.xlu1 %268 }
 0x1b7   : > { %776 = vlog2.f32 %v269_v20 }
 0x1bd   : > { %v777_v25 = vpop.eup %776 }
 0x1be   : > { %v273_v26 = vmul.f32 0.6931472, %v777_v25  ;;  %v271_v27 = vpop.xlane.xlu1 %270 }
 0x1bf   : > { %778 = vlog2.f32 %v271_v27 }
 0x1c0   : > { %v276_v28 = vadd.f32 %v273_v26, %v259_v33 }
 0x1c2   : > { %v278_v14 = vsub.f32 -2.0794415, %v276_v28 }
 0x1c4   : > { %v284_v31 = vadd.f32 %v980_v32, %v278_v14 }
 0x1c5   : > { %v779_v12 = vpop.eup %778 }
 0x1c6   : > { %v275_v10 = vmul.f32 0.6931472, %v779_v12  ;;  %v286_v36 = vrot.slane %v284_v31, 4 }
 0x1c8   : > { %v277_v8 = vadd.f32 %v275_v10, %v261_v15  ;;  %v287_v37 = vmax.f32 %v284_v31, %v286_v36 }
 0x1ca   : > { %v279_v38 = vsub.f32 -2.0794415, %v277_v8  ;;  %v288_v6 = vrot.slane %v287_v37, 2 }
 0x1cc   : > { %v285_v39 = vadd.f32 %v976_v30, %v279_v38  ;;  %v289_v4 = vmax.f32 %v287_v37, %v288_v6 }
 0x1ce   : > { %v290_v40 = vrot.slane %v289_v4, 1  ;;  %v292_v41 = vrot.slane %v285_v39, 4 }
 0x1d0   : > { %v291_v42 = vmax.f32 %v289_v4, %v290_v40  ;;  %v293_v13 = vmax.f32 %v285_v39, %v292_v41 }
 0x1d2   : > { %v298_v11 = vsub.f32 %v284_v31, %v291_v42  ;;  %v294_v43 = vrot.slane %v293_v13, 2 }
 0x1d4   : > { %v300_v44 = vmul.f32 1.442695, %v298_v11  ;;  %v295_v45 = vmax.f32 %v293_v13, %v294_v43 }
 0x1d6   : > { %780 = vpow2.f32 %v300_v44  ;;  %v296_v9 = vrot.slane %v295_v45, 1 }
 0x1d8   : > { %v297_v46 = vmax.f32 %v295_v45, %v296_v9 }
 0x1da   : > { %v299_v47 = vsub.f32 %v285_v39, %v297_v46 }
 0x1dc   : > { %v781_v48 = vpop.eup %780  ;;  %v302_v7 = vmul.f32 1.442695, %v299_v47 }
 0x1dd   : > { %v304_v49 = vrot.slane %v781_v48, 4 }
 0x1de   : > { %782 = vpow2.f32 %v302_v7 }
 0x1df   : > { %v305_v50 = vadd.f32 %v781_v48, %v304_v49 }
 0x1e1   : > { %v306_v51 = vrot.slane %v305_v50, 2 }
 0x1e3   : > { %v307_v52 = vadd.f32 %v306_v51, %v305_v50 }
 0x1e4   : > { %v783_v5 = vpop.eup %782 }
 0x1e5   : > { %v308_v53 = vrot.slane %v307_v52, 1  ;;  %v310_v54 = vrot.slane %v783_v5, 4 }
 0x1e7   : > { %v309_v55 = vadd.f32 %v308_v53, %v307_v52  ;;  %v311_v56 = vadd.f32 %v783_v5, %v310_v54 }
 0x1e9   : > { %784 = vlog2.f32 %v309_v55  ;;  %v312_v3 = vrot.slane %v311_v56, 2 }
 0x1eb   : > { %v313_v57 = vadd.f32 %v312_v3, %v311_v56 }
 0x1ed   : > { %v314_v58 = vrot.slane %v313_v57, 1 }
 0x1ef   : > { %v785_v60 = vpop.eup %784  ;;  %v315_v61 = vadd.f32 %v314_v58, %v313_v57 }
 0x1f0   : > { %v317_v62 = vmul.f32 0.6931472, %v785_v60 }
 0x1f1   : > { %786 = vlog2.f32 %v315_v61 }
 0x1f2   : > { %v320_v63 = vadd.f32 %v317_v62, %v291_v42 }
 0x1f4   : > { %v322_v0 = vsub.f32 -2.0794415, %v320_v63 }
 0x1f6   : > { %v326_v1 = vsel %vm215_vm1, %v322_v0, 0.0 }
 0x1f7   : > { %v787_v2 = vpop.eup %786  ;;  %v328_v21 = vadd.f32 %v326_v1, %v284_v31 }
 0x1f8   : > { %v319_v22 = vmul.f32 0.6931472, %v787_v2 }
 0x1f9   : > { %330 = vmax.xlane.f32.xlu2 %v328_v21 }
 0x1fa   : > { %v321_v23 = vadd.f32 %v319_v22, %v297_v46 }
 0x1fc   : > { %v323_v24 = vsub.f32 -2.0794415, %v321_v23 }
 0x1fe   : > { %v327_v29 = vsel %vm215_vm1, %v323_v24, 0.0 }
 0x1ff   : > { %v329_v30 = vadd.f32 %v327_v29, %v285_v39 }
 0x201   : > { %332 = vmax.xlane.f32.xlu2 %v329_v30 }
 0x26c   : > { %v331_v32 = vpop.xlane.xlu2 %330 }
 0x26d   : > { %v334_v33 = vsub.f32 %v328_v21, %v331_v32 }
 0x26f   : > { %v336_v34 = vmul.f32 1.442695, %v334_v33 }
 0x271   : > { %788 = vpow2.f32 %v336_v34 }
 0x274   : > { %v333_v35 = vpop.xlane.xlu2 %332 }
 0x275   : > { %v335_v15 = vsub.f32 %v329_v30, %v333_v35 }
 0x277   : > { %v789_v16 = vpop.eup %788  ;;  %v338_v17 = vmul.f32 1.442695, %v335_v15 }
 0x278   : > { %340 = vadd.xlane.f32.xlu0 %v789_v16 }
 0x279   : > { %790 = vpow2.f32 %v338_v17 }
 0x27f   : > { %v791_v18 = vpop.eup %790 }
 0x280   : > { %342 = vadd.xlane.f32.xlu1 %v791_v18 }
 0x2eb   : > { %v341_v19 = vpop.xlane.xlu0 %340 }
 0x2ec   : > { %792 = vlog2.f32 %v341_v19 }
 0x2f2   : > { %v793_v20 = vpop.eup %792 }
 0x2f3   : > { %v345_v25 = vmul.f32 0.6931472, %v793_v20  ;;  %v343_v26 = vpop.xlane.xlu1 %342 }
 0x2f4   : > { %794 = vlog2.f32 %v343_v26 }
 0x2f5   : > { %v348_v27 = vadd.f32 %v345_v25, %v331_v32 }
 0x2f7   : > { %v350_v28 = vsub.f32 -2.0794415, %v348_v27 }
 0x2f9   : > { %v354_v14 = vadd.f32 %v350_v28, %v328_v21 }
 0x2fa   : > { %v795_v31 = vpop.eup %794 }
 0x2fb   : > { %v347_v12 = vmul.f32 0.6931472, %v795_v31  ;;  %v356_v10 = vrot.slane %v354_v14, 4 }
 0x2fd   : > { %v349_v36 = vadd.f32 %v347_v12, %v333_v35  ;;  %v357_v8 = vmax.f32 %v354_v14, %v356_v10 }
 0x2ff   : > { %v351_v37 = vsub.f32 -2.0794415, %v349_v36  ;;  %v358_v38 = vrot.slane %v357_v8, 2 }
 0x301   : > { %v355_v6 = vadd.f32 %v351_v37, %v329_v30  ;;  %v359_v39 = vmax.f32 %v357_v8, %v358_v38 }
 0x303   : > { %v360_v4 = vrot.slane %v359_v39, 1  ;;  %v362_v40 = vrot.slane %v355_v6, 4 }
 0x305   : > { %v361_v41 = vmax.f32 %v359_v39, %v360_v4  ;;  %v363_v42 = vmax.f32 %v355_v6, %v362_v40 }
 0x307   : > { %v368_v13 = vsub.f32 %v354_v14, %v361_v41  ;;  %v364_v11 = vrot.slane %v363_v42, 2 }
 0x309   : > { %v370_v43 = vmul.f32 1.442695, %v368_v13  ;;  %v365_v44 = vmax.f32 %v363_v42, %v364_v11 }
 0x30b   : > { %796 = vpow2.f32 %v370_v43  ;;  %v366_v45 = vrot.slane %v365_v44, 1 }
 0x30d   : > { %v367_v9 = vmax.f32 %v365_v44, %v366_v45 }
 0x30f   : > { %v369_v46 = vsub.f32 %v355_v6, %v367_v9 }
 0x311   : > { %v797_v47 = vpop.eup %796  ;;  %v372_v48 = vmul.f32 1.442695, %v369_v46 }
 0x312   : > { %v374_v7 = vrot.slane %v797_v47, 4 }
 0x313   : > { %798 = vpow2.f32 %v372_v48 }
 0x314   : > { %v375_v49 = vadd.f32 %v797_v47, %v374_v7 }
 0x316   : > { %v376_v50 = vrot.slane %v375_v49, 2 }
 0x318   : > { %v377_v51 = vadd.f32 %v376_v50, %v375_v49 }
 0x319   : > { %v799_v52 = vpop.eup %798 }
 0x31a   : > { %v378_v5 = vrot.slane %v377_v51, 1  ;;  %v380_v53 = vrot.slane %v799_v52, 4 }
 0x31c   : > { %v379_v54 = vadd.f32 %v378_v5, %v377_v51  ;;  %v381_v55 = vadd.f32 %v799_v52, %v380_v53 }
 0x31e   : > { %800 = vlog2.f32 %v379_v54  ;;  %v382_v56 = vrot.slane %v381_v55, 2 }
 0x320   : > { %v383_v3 = vadd.f32 %v382_v56, %v381_v55 }
 0x322   : > { %v384_v57 = vrot.slane %v383_v3, 1 }
 0x324   : > { %v801_v58 = vpop.eup %800  ;;  %v385_v60 = vadd.f32 %v384_v57, %v383_v3 }
 0x325   : > { %v387_v61 = vmul.f32 0.6931472, %v801_v58 }
 0x326   : > { %802 = vlog2.f32 %v385_v60 }
 0x327   : > { %v390_v62 = vadd.f32 %v387_v61, %v361_v41 }
 0x329   : > { %v392_v63 = vsub.f32 -2.0794415, %v390_v62 }
 0x32b   : > { %v394_v0 = vsel %vm215_vm1, %v392_v63, 0.0 }
 0x32c   : > { %v803_v1 = vpop.eup %802  ;;  %v396_v2 = vadd.f32 %v394_v0, %v354_v14 }
 0x32d   : > { %v389_v21 = vmul.f32 0.6931472, %v803_v1 }
 0x32e   : > { %398 = vmax.xlane.f32.xlu2 %v396_v2 }
 0x32f   : > { %v391_v22 = vadd.f32 %v389_v21, %v367_v9 }
 0x331   : > { %v393_v23 = vsub.f32 -2.0794415, %v391_v22 }
 0x333   : > { %v395_v24 = vsel %vm215_vm1, %v393_v23, 0.0 }
 0x334   : > { %v397_v29 = vadd.f32 %v395_v24, %v355_v6 }
 0x336   : > { %400 = vmax.xlane.f32.xlu0 %v397_v29 }
 0x3a1   : > { %v399_v30 = vpop.xlane.xlu2 %398 }
 0x3a2   : > { %v402_v32 = vsub.f32 %v396_v2, %v399_v30 }
 0x3a4   : > { %v404_v33 = vmul.f32 1.442695, %v402_v32 }
 0x3a6   : > { %804 = vpow2.f32 %v404_v33 }
 0x3a9   : > { %v401_v34 = vpop.xlane.xlu0 %400 }
 0x3aa   : > { %v403_v35 = vsub.f32 %v397_v29, %v401_v34 }
 0x3ac   : > { %v805_v15 = vpop.eup %804  ;;  %v406_v16 = vmul.f32 1.442695, %v403_v35 }
 0x3ad   : > { %408 = vadd.xlane.f32.xlu1 %v805_v15 }
 0x3ae   : > { %806 = vpow2.f32 %v406_v16 }
 0x3b4   : > { %v807_v17 = vpop.eup %806 }
 0x3b5   : > { %410 = vadd.xlane.f32.xlu2 %v807_v17 }
 0x420   : > { %v409_v18 = vpop.xlane.xlu1 %408 }
 0x421   : > { %808 = vlog2.f32 %v409_v18 }
 0x427   : > { %v809_v19 = vpop.eup %808 }
 0x428   : > { %v413_v20 = vmul.f32 0.6931472, %v809_v19  ;;  %v411_v25 = vpop.xlane.xlu2 %410 }
 0x429   : > { %810 = vlog2.f32 %v411_v25 }
 0x42a   : > { %v416_v26 = vadd.f32 %v413_v20, %v399_v30 }
 0x42c   : > { %v418_v27 = vsub.f32 -2.0794415, %v416_v26 }
 0x42e   : > { %v422_v28 = vadd.f32 %v418_v27, %v396_v2 }
 0x42f   : > { %v811_v14 = vpop.eup %810 }
 0x430   : > { %v415_v31 = vmul.f32 0.6931472, %v811_v14  ;;  %v424_v12 = vrot.slane %v422_v28, 4 }
 0x432   : > { %v417_v10 = vadd.f32 %v415_v31, %v401_v34  ;;  %v425_v36 = vmax.f32 %v422_v28, %v424_v12 }
 0x434   : > { %v419_v8 = vsub.f32 -2.0794415, %v417_v10  ;;  %v426_v37 = vrot.slane %v425_v36, 2 }
 0x436   : > { %v423_v38 = vadd.f32 %v419_v8, %v397_v29  ;;  %v427_v6 = vmax.f32 %v425_v36, %v426_v37 }
 0x438   : > { %v428_v39 = vrot.slane %v427_v6, 1  ;;  %v430_v4 = vrot.slane %v423_v38, 4 }
 0x43a   : > { %v429_v40 = vmax.f32 %v427_v6, %v428_v39  ;;  %v431_v41 = vmax.f32 %v423_v38, %v430_v4 }
 0x43c   : > { %v436_v42 = vsub.f32 %v422_v28, %v429_v40  ;;  %v432_v13 = vrot.slane %v431_v41, 2 }
 0x43e   : > { %v438_v11 = vmul.f32 1.442695, %v436_v42  ;;  %v433_v43 = vmax.f32 %v431_v41, %v432_v13 }
 0x440   : > { %812 = vpow2.f32 %v438_v11  ;;  %v434_v44 = vrot.slane %v433_v43, 1 }
 0x442   : > { %v435_v45 = vmax.f32 %v433_v43, %v434_v44 }
 0x444   : > { %v437_v9 = vsub.f32 %v423_v38, %v435_v45 }
 0x446   : > { %v813_v46 = vpop.eup %812  ;;  %v440_v47 = vmul.f32 1.442695, %v437_v9 }
 0x447   : > { %v442_v48 = vrot.slane %v813_v46, 4 }
 0x448   : > { %814 = vpow2.f32 %v440_v47 }
 0x449   : > { %v443_v7 = vadd.f32 %v813_v46, %v442_v48 }
 0x44b   : > { %v444_v49 = vrot.slane %v443_v7, 2 }
 0x44d   : > { %v445_v50 = vadd.f32 %v444_v49, %v443_v7 }
 0x44e   : > { %v815_v51 = vpop.eup %814 }
 0x44f   : > { %v446_v52 = vrot.slane %v445_v50, 1  ;;  %v448_v5 = vrot.slane %v815_v51, 4 }
 0x451   : > { %v447_v53 = vadd.f32 %v446_v52, %v445_v50  ;;  %v449_v54 = vadd.f32 %v815_v51, %v448_v5 }
 0x453   : > { %816 = vlog2.f32 %v447_v53  ;;  %v450_v55 = vrot.slane %v449_v54, 2 }
 0x455   : > { %v451_v56 = vadd.f32 %v450_v55, %v449_v54 }
 0x457   : > { %v452_v3 = vrot.slane %v451_v56, 1 }
 0x459   : > { %v817_v57 = vpop.eup %816  ;;  %v453_v58 = vadd.f32 %v452_v3, %v451_v56 }
 0x45a   : > { %v455_v60 = vmul.f32 0.6931472, %v817_v57 }
 0x45b   : > { %818 = vlog2.f32 %v453_v58 }
 0x45c   : > { %v458_v61 = vadd.f32 %v455_v60, %v429_v40 }
 0x45e   : > { %v460_v62 = vsub.f32 -2.0794415, %v458_v61 }
 0x460   : > { %v462_v63 = vsel %vm215_vm1, %v460_v62, 0.0 }
 0x461   : > { %v819_v0 = vpop.eup %818  ;;  %v464_v1 = vadd.f32 %v462_v63, %v422_v28 }
 0x462   : > { %v457_v2 = vmul.f32 0.6931472, %v819_v0 }
 0x463   : > { %466 = vmax.xlane.f32.xlu0 %v464_v1 }
 0x464   : > { %v459_v21 = vadd.f32 %v457_v2, %v435_v45 }
 0x466   : > { %v461_v22 = vsub.f32 -2.0794415, %v459_v21 }
 0x468   : > { %v463_v23 = vsel %vm215_vm1, %v461_v22, 0.0 }
 0x469   : > { %v465_v24 = vadd.f32 %v463_v23, %v423_v38 }
 0x46b   : > { %468 = vmax.xlane.f32.xlu1 %v465_v24 }
 0x4d6   : > { %v467_v29 = vpop.xlane.xlu0 %466 }
 0x4d7   : > { %v470_v30 = vsub.f32 %v464_v1, %v467_v29 }
 0x4d9   : > { %v472_v32 = vmul.f32 1.442695, %v470_v30 }
 0x4db   : > { %820 = vpow2.f32 %v472_v32 }
 0x4de   : > { %v469_v33 = vpop.xlane.xlu1 %468 }
 0x4df   : > { %v471_v34 = vsub.f32 %v465_v24, %v469_v33 }
 0x4e1   : > { %v821_v35 = vpop.eup %820  ;;  %v474_v15 = vmul.f32 1.442695, %v471_v34 }
 0x4e2   : > { %476 = vadd.xlane.f32.xlu2 %v821_v35 }
 0x4e3   : > { %822 = vpow2.f32 %v474_v15 }
 0x4e9   : > { %v823_v16 = vpop.eup %822 }
 0x4ea   : > { %478 = vadd.xlane.f32.xlu0 %v823_v16 }
 0x555   : > { %v477_v17 = vpop.xlane.xlu2 %476 }
 0x556   : > { %824 = vlog2.f32 %v477_v17 }
 0x55c   : > { %v825_v18 = vpop.eup %824 }
 0x55d   : > { %v481_v19 = vmul.f32 0.6931472, %v825_v18  ;;  %v479_v20 = vpop.xlane.xlu0 %478 }
 0x55e   : > { %826 = vlog2.f32 %v479_v20 }
 0x55f   : > { %v484_v25 = vadd.f32 %v481_v19, %v467_v29 }
 0x561   : > { %v486_v26 = vsub.f32 -2.0794415, %v484_v25 }
 0x563   : > { %v490_v27 = vadd.f32 %v486_v26, %v464_v1 }
 0x564   : > { %v827_v28 = vpop.eup %826 }
 0x565   : > { %v483_v14 = vmul.f32 0.6931472, %v827_v28  ;;  %v492_v31 = vrot.slane %v490_v27, 4 }
 0x567   : > { %v485_v12 = vadd.f32 %v483_v14, %v469_v33  ;;  %v493_v10 = vmax.f32 %v490_v27, %v492_v31 }
 0x569   : > { %v487_v36 = vsub.f32 -2.0794415, %v485_v12  ;;  %v494_v8 = vrot.slane %v493_v10, 2 }
 0x56b   : > { %v491_v37 = vadd.f32 %v487_v36, %v465_v24  ;;  %v495_v38 = vmax.f32 %v493_v10, %v494_v8 }
 0x56d   : > { %v496_v6 = vrot.slane %v495_v38, 1  ;;  %v498_v39 = vrot.slane %v491_v37, 4 }
 0x56f   : > { %v497_v4 = vmax.f32 %v495_v38, %v496_v6  ;;  %v499_v40 = vmax.f32 %v491_v37, %v498_v39 }
 0x571   : > { %v504_v41 = vsub.f32 %v490_v27, %v497_v4  ;;  %v500_v42 = vrot.slane %v499_v40, 2 }
 0x573   : > { %v506_v13 = vmul.f32 1.442695, %v504_v41  ;;  %v501_v11 = vmax.f32 %v499_v40, %v500_v42 }
 0x575   : > { %828 = vpow2.f32 %v506_v13  ;;  %v502_v43 = vrot.slane %v501_v11, 1 }
 0x577   : > { %v503_v44 = vmax.f32 %v501_v11, %v502_v43 }
 0x579   : > { %v505_v45 = vsub.f32 %v491_v37, %v503_v44 }
 0x57b   : > { %v829_v9 = vpop.eup %828  ;;  %v508_v46 = vmul.f32 1.442695, %v505_v45 }
 0x57c   : > { %v510_v47 = vrot.slane %v829_v9, 4 }
 0x57d   : > { %830 = vpow2.f32 %v508_v46 }
 0x57e   : > { %v511_v48 = vadd.f32 %v829_v9, %v510_v47 }
 0x580   : > { %v512_v7 = vrot.slane %v511_v48, 2 }
 0x582   : > { %v513_v49 = vadd.f32 %v512_v7, %v511_v48 }
 0x583   : > { %v831_v50 = vpop.eup %830 }
 0x584   : > { %v514_v51 = vrot.slane %v513_v49, 1  ;;  %v516_v52 = vrot.slane %v831_v50, 4 }
 0x586   : > { %v515_v5 = vadd.f32 %v514_v51, %v513_v49  ;;  %v517_v53 = vadd.f32 %v831_v50, %v516_v52 }
 0x588   : > { %832 = vlog2.f32 %v515_v5  ;;  %v518_v54 = vrot.slane %v517_v53, 2 }
 0x58a   : > { %v519_v55 = vadd.f32 %v518_v54, %v517_v53 }
 0x58c   : > { %v520_v56 = vrot.slane %v519_v55, 1 }
 0x58e   : > { %v833_v3 = vpop.eup %832  ;;  %v521_v57 = vadd.f32 %v520_v56, %v519_v55 }
 0x58f   : > { %v523_v58 = vmul.f32 0.6931472, %v833_v3 }
 0x590   : > { %834 = vlog2.f32 %v521_v57 }
 0x591   : > { %v526_v60 = vadd.f32 %v523_v58, %v497_v4 }
 0x593   : > { %v528_v61 = vsub.f32 -2.0794415, %v526_v60 }
 0x595   : > { %v530_v62 = vsel %vm215_vm1, %v528_v61, 0.0 }
 0x596   : > { %v835_v63 = vpop.eup %834  ;;  %v532_v0 = vadd.f32 %v530_v62, %v490_v27 }
 0x597   : > { %v525_v1 = vmul.f32 0.6931472, %v835_v63 }
 0x598   : > { %534 = vmax.xlane.f32.xlu1 %v532_v0 }
 0x599   : > { %v527_v2 = vadd.f32 %v525_v1, %v503_v44 }
 0x59b   : > { %v529_v21 = vsub.f32 -2.0794415, %v527_v2 }
 0x59d   : > { %v531_v22 = vsel %vm215_vm1, %v529_v21, 0.0 }
 0x59e   : > { %v533_v23 = vadd.f32 %v531_v22, %v491_v37 }
 0x5a0   : > { %536 = vmax.xlane.f32.xlu2 %v533_v23 }
 0x60b   : > { %v535_v24 = vpop.xlane.xlu1 %534 }
 0x60c   : > { %v538_v29 = vsub.f32 %v532_v0, %v535_v24 }
 0x60e   : > { %v540_v30 = vmul.f32 1.442695, %v538_v29 }
 0x610   : > { %836 = vpow2.f32 %v540_v30 }
 0x613   : > { %v537_v32 = vpop.xlane.xlu2 %536 }
 0x614   : > { %v539_v33 = vsub.f32 %v533_v23, %v537_v32 }
 0x616   : > { %v837_v34 = vpop.eup %836  ;;  %v542_v35 = vmul.f32 1.442695, %v539_v33 }
 0x617   : > { %544 = vadd.xlane.f32.xlu0 %v837_v34 }
 0x618   : > { %838 = vpow2.f32 %v542_v35 }
 0x61e   : > { %v839_v15 = vpop.eup %838 }
 0x61f   : > { %546 = vadd.xlane.f32.xlu1 %v839_v15 }
 0x68a   : > { %v545_v16 = vpop.xlane.xlu0 %544 }
 0x68b   : > { %840 = vlog2.f32 %v545_v16 }
 0x691   : > { %v841_v17 = vpop.eup %840 }
 0x692   : > { %v549_v18 = vmul.f32 0.6931472, %v841_v17  ;;  %v547_v19 = vpop.xlane.xlu1 %546 }
 0x693   : > { %842 = vlog2.f32 %v547_v19 }
 0x694   : > { %v552_v20 = vadd.f32 %v549_v18, %v535_v24 }
 0x696   : > { %v554_v25 = vsub.f32 -2.0794415, %v552_v20 }
 0x698   : > { %v1177_v26 = vadd.f32 %v554_v25, %v532_v0  ;;  %v602_v27 = vand.u32 2147483647, %v554_v25 }
 0x699   : > { %v843_v28 = vpop.eup %842 }
 0x69a   : > { %v560_v14 = vrot.slane %v1177_v26, 4  ;;  %v604_v31 = vrot.slane %v602_v27, 4  ;;  %v551_v12 = vmul.f32 0.6931472, %v843_v28 }
 0x69c   : > { %v561_v10 = vmax.f32 %v1177_v26, %v560_v14  ;;  %v553_v36 = vadd.f32 %v551_v12, %v537_v32  ;;  %v605_v8 = vadd.f32 %v604_v31, %v602_v27  ;;  %v631_v14 = vstv %s1148_s27 }
 0x69d   : > { %vm637_vm2 = vweird.f32 %v631_v14 }
 0x69e   : > { %v562_v37 = vrot.slane %v561_v10, 2  ;;  %v555_v38 = vsub.f32 -2.0794415, %v553_v36  ;;  %v606_v6 = vrot.slane %v605_v8, 2 }
 0x6a0   : > { %v563_v39 = vmax.f32 %v561_v10, %v562_v37  ;;  %v559_v4 = vadd.f32 %v555_v38, %v533_v23  ;;  %v603_v40 = vand.u32 2147483647, %v555_v38  ;;  %v607_v11 = vadd.f32 %v606_v6, %v605_v8 }
 0x6a2   : > { %v564_v41 = vrot.slane %v563_v39, 1  ;;  %v566_v42 = vrot.slane %v559_v4, 4  ;;  %v610_v13 = vrot.slane %v603_v40, 4  ;;  %v608_v47 = vrot.slane %v607_v11, 1 }
 0x6a4   : > { %v565_v43 = vmax.f32 %v563_v39, %v564_v41  ;;  %v567_v44 = vmax.f32 %v559_v4, %v566_v42  ;;  %v611_v45 = vadd.f32 %v610_v13, %v603_v40  ;;  %v609_v52 = vadd.f32 %v608_v47, %v607_v11 }
 0x6a5   : > { %v641_v39 = vand.u32 2147483647, %v631_v14 }
 0x6a6   : > { %v572_v9 = vsub.f32 %v1177_v26, %v565_v43  ;;  %v568_v46 = vrot.slane %v567_v44, 2  ;;  %v612_v48 = vrot.slane %v611_v45, 2  ;;  %v618_v56 = vsel %vm233_vm0, %v609_v52, 0.0 }
 0x6a7   : > { %vm642_vm5 = vcmp.eq.f32.partialorder %v641_v39, 8.507059e+37 }
 0x6a8   : > { %v574_v7 = vmul.f32 1.442695, %v572_v9  ;;  %v569_v49 = vmax.f32 %v567_v44, %v568_v46  ;;  %v613_v50 = vadd.f32 %v612_v48, %v611_v45 }
 0x6aa   : > { %844 = vpow2.f32 %v574_v7  ;;  %v570_v51 = vrot.slane %v569_v49, 1  ;;  %v614_v5 = vrot.slane %v613_v50, 1 }
 0x6ac   : > { %v571_v53 = vmax.f32 %v569_v49, %v570_v51  ;;  %v615_v54 = vadd.f32 %v614_v5, %v613_v50 }
 0x6ae   : > { %v573_v55 = vsub.f32 %v559_v4, %v571_v53  ;;  %v619_v3 = vsel %vm233_vm0, %v615_v54, 0.0 }
 0x6af   : > { %v620_v57 = vadd.f32 %v619_v3, %v618_v56 }
 0x6b0   : > { %v845_v58 = vpop.eup %844  ;;  %v576_v60 = vmul.f32 1.442695, %v573_v55 }
 0x6b1   : > { %v578_v61 = vrot.slane %v845_v58, 4  ;;  %621 = vadd.xlane.f32.xlu2 %v620_v57 }
 0x6b2   : > { %846 = vpow2.f32 %v576_v60 }
 0x6b3   : > { %v579_v62 = vadd.f32 %v845_v58, %v578_v61 }
 0x6b5   : > { %v580_v63 = vrot.slane %v579_v62, 2 }
 0x6b7   : > { %v581_v0 = vadd.f32 %v580_v63, %v579_v62 }
 0x6b8   : > { %v847_v1 = vpop.eup %846 }
 0x6b9   : > { %v582_v2 = vrot.slane %v581_v0, 1  ;;  %v584_v21 = vrot.slane %v847_v1, 4 }
 0x6bb   : > { %v583_v22 = vadd.f32 %v582_v2, %v581_v0  ;;  %v585_v23 = vadd.f32 %v847_v1, %v584_v21 }
 0x6bd   : > { %848 = vlog2.f32 %v583_v22  ;;  %v586_v24 = vrot.slane %v585_v23, 2 }
 0x6bf   : > { %v587_v29 = vadd.f32 %v586_v24, %v585_v23 }
 0x6c1   : > { %v588_v30 = vrot.slane %v587_v29, 1 }
 0x6c3   : > { %v849_v32 = vpop.eup %848  ;;  %v589_v33 = vadd.f32 %v588_v30, %v587_v29 }
 0x6c4   : > { %v591_v34 = vmul.f32 0.6931472, %v849_v32 }
 0x6c5   : > { %850 = vlog2.f32 %v589_v33 }
 0x6c6   : > { %v594_v35 = vadd.f32 %v591_v34, %v565_v43  ;;  %852 = vrcp.f32 %v631_v14 }
 0x6c8   : > { %v596_v15 = vsub.f32 -2.0794415, %v594_v35 }
 0x6ca   : > { %v598_v16 = vsel %vm215_vm1, %v596_v15, 0.0 }
 0x6cb   : > { %v851_v17 = vpop.eup %850  ;;  %v600_v18 = vadd.f32 %v598_v16, %v1177_v26   ;;  %v643_v26 = vand.u32 2147483648, %v631_v14 }
 0x6cc   : > { %v593_v19 = vmul.f32 0.6931472, %v851_v17  ;;  %v853_v31 = vpop.eup %852 }
 0x6cd   : > { %v633_v12 = vmul.f32 %v853_v31, %v631_v14  ;;  %vm638_vm3 = vweird.f32 %v853_v31  ;;  %v644_v42 = vor.u32 1.1754944e-38, %v643_v26  ;;  %v1227_v32 = vmov %v600_v18 }
 0x6ce   : > { %v595_v20 = vadd.f32 %v593_v19, %v571_v53  ;;  %vm639_vm4 = vmor %vm637_vm2, %vm638_vm3 }
 0x6cf   : > { %v634_v10 = vsub.f32 1.0, %v633_v12 }
 0x6d0   : > { %v597_v25 = vsub.f32 -2.0794415, %v595_v20 }
 0x6d1   : > { %v635_v8 = vmul.f32 %v853_v31, %v634_v10 }
 0x6d2   : > { %v599_v27 = vsel %vm215_vm1, %v597_v25, 0.0 }
 0x6d3   : > { %v601_v28 = vadd.f32 %v599_v27, %v559_v4   ;;  %v636_v6 = vadd.f32 %v853_v31, %v635_v8 }
 0x6d5   : > { %v640_v4 = vsel %vm639_vm4, %v853_v31, %v636_v6  ;;  %v1226_v30 = vmov %v601_v28 }
 0x6d6   : > { %v645_v43 = vsel %vm642_vm5, %v644_v42, %v640_v4 }
 0x724   : > { %v622_v36 = vpop.xlane.xlu2 %621 }
 0x725   : > { %v623_v37 = vrot.slane %v622_v36, 4 }
 0x727   : > { %v624_v38 = vadd.f32 %v623_v37, %v622_v36 }
 0x729   : > { %v625_v40 = vrot.slane %v624_v38, 2 }
 0x72b   : > { %v626_v41 = vadd.f32 %v625_v40, %v624_v38 }
 0x72d   : > { %v627_v13 = vrot.slane %v626_v41, 1 }
 0x72f   : > { %v628_v11 = vadd.f32 %v627_v13, %v626_v41 }
 0x731   : > { %735 = vpush %v628_v11 }
 0x732   : > { %737 = vpush %v645_v43 }
 0x762   : > { %s736_s30 = spop %735 }
 0x763   : > { %s630_s5 = smul.f32 0.1, %s736_s30  ;;  %s738_s6 = spop %737 }
 0x765   : > { %s647_s7 = smul.f32 %s738_s6, %s630_s5 }
 0x767   : > { %p253_p1 = scmp.ge.f32.partialorder %s647_s7, 0.1 }
 0x769   : > { %p254_p2 = pnand %p253_p1, %p252_p0 }
 0x76a   :  { %v649_v44 = vmul.f32 (%p254_p2), 1.442695, %v600_v18  ;;  %v651_v45 = vmul.f32 (%p254_p2), 1.442695, %v601_v28  ;;  %v655_v9 = vld [vmem:[#allocation8] sm:$0xff] (%p254_p2)  ;;  %v656_v7 = vld [vmem:[#allocation8 + $0x8] sm:$0xff] (%p254_p2) }
 0x76b   :  { %257 = sbr.rel (!%p254_p2) target bundleno = 196 (0xc4), region = 59  ;;  %s993_s8 = smov (%p254_p2), [#allocation7]  }
 0x76c   :  { %854 = vpow2.f32 (%p254_p2), %v649_v44  ;;  %s683_s9 = sshll.u32 (%p254_p2), %s993_s8, 4  ;;  %s685_s12 = sshll.u32 (%p254_p2), %s1224_s3, 4  ;;  %s684_s9 = int_to_ptr.vmem [resolvable:$true] %s683_s9  ;;  %s686_s12 = int_to_ptr.hbm [resolvable:$true] %s685_s12 }
 0x76d   :  { %856 = vpow2.f32 (%p254_p2), %v651_v45  ;;  %s994_s13 = smov (%p254_p2), [#allocation8]   ;;  %s698_s17 = sshll.u32 (%p254_p2), %s1225_s4, 4  ;;  %s699_s17 = int_to_ptr.hbm [resolvable:$true] %s698_s17 }
 0x76e   :  { %s696_s14 = sshll.u32 (%p254_p2), %s994_s13, 4  ;;  %s697_s14 = int_to_ptr.vmem [resolvable:$true] %s696_s14 }
 0x76f   :  { %704 = dma.vmem_to_hbm [thread:$0]  (%p254_p2), %s697_s14, 256, %s699_s17, [#allocation9], %s987_s23, %s987_s23, %s988_s24  }
 0x772   :  { %v855_v46 = vpop.eup %854 }
 0x773   :  { %v857_v47 = vpop.eup %856  ;;  %v657_v48 = vmul.f32 %v855_v46, %v655_v9  ;;  %653 = vst [vmem:[#allocation7] sm:$0xff] %v855_v46 }
 0x774   :  { %654 = vst [vmem:[#allocation7 + $0x8] sm:$0xff] %v857_v47  ;;  %v658_v49 = vmul.f32 %v857_v47, %v656_v7 }
 0x775   :  { %659 = vadd.xlane.f32.xlu0 %v657_v48  ;;  %691 = dma.vmem_to_hbm [thread:$0]  %s684_s9, 256, %s686_s12, [#allocation4], %s987_s23, %s987_s23, %s988_s24  }
 0x77d   :  { %661 = vadd.xlane.f32.xlu0 %v658_v49 }
 0x7e8   :  { %v660_v59 = vpop.xlane.xlu0 %659 }
 0x7e9   :  { %v663_v50 = vrot.slane %v660_v59, 4 }
 0x7eb   :  { %v664_v51 = vadd.f32 %v663_v50, %v660_v59 }
 0x7ed   :  { %v665_v52 = vrot.slane %v664_v51, 2 }
 0x7ef   :  { %v666_v5 = vadd.f32 %v665_v52, %v664_v51 }
 0x7f0   :  { %v662_v53 = vpop.xlane.xlu0 %661 }
 0x7f1   :  { %v667_v54 = vrot.slane %v666_v5, 1  ;;  %v669_v55 = vrot.slane %v662_v53, 4 }
 0x7f3   :  { %v668_v56 = vadd.f32 %v667_v54, %v666_v5  ;;  %v670_v3 = vadd.f32 %v669_v55, %v662_v53 }
 0x7f5   :  { %675 = vst.msk [vmem:[%s1223_s2] sm:$0x1] %vm233_vm0, %v668_v56  ;;  %v671_v57 = vrot.slane %v670_v3, 2 }
 0x7f7   :  { %v672_v58 = vadd.f32 %v671_v57, %v670_v3 }
 0x7f9   :  { %v673_v60 = vrot.slane %v672_v58, 1 }
 0x7fb   :  { %v674_v61 = vadd.f32 %v673_v60, %v672_v58 }
 0x7fd   :  { %676 = vst.msk [vmem:[%s1223_s2 + $0x1] sm:$0x1] %vm233_vm0, %v674_v61 }
 0x7fe   :  { %970 = dma.done.wait [#allocation4], 256  }
 0x7ff   :  { %971 = vsyncadd [#allocation4], 4294967040 }
 0x800   :  { %972 = dma.done.wait [#allocation9], 256  }
 0x801   :  { %973 = vsyncadd [#allocation9], 4294967040 }
 0x802   :  { %715 = vsyncpa [#allocation3], 1 }
 0x803   :  { %716 = vsyncpa [#allocation6], 1 }
 0x804   :  { %717 = vsyncpa [#allocation4], 1 }
 0x805   :  { %718 = vsyncpa [#allocation9], 1 }

</bundles_post_ra>
